<compile_context>
chip_gen: v5e
topology: v5e:2x2
jax: 0.10.0
libtpu: 0.0.40
codegen_flags: <defaults>
</compile_context>

<pallas_src>
import functools

import jax
import jax.numpy as jnp
from jax.experimental import pallas as pl
from jax.experimental.pallas import tpu as pltpu

_EPS_BN = 1e-5          # InPlaceABN default eps
_LRELU_SLOPE = 0.01     # InPlaceABN default activation: leaky_relu(0.01)

NFC_MIDAS = {4: 512, 8: 512, 16: 256, 32: 128, 64: 64,
             128: 64, 256: 32, 512: 16, 1024: 8}


def _vmem():
    return pl.BlockSpec(memory_space=pltpu.MemorySpace.VMEM)


# ---------------------------------------------------------------------------
# Pallas kernels
# ---------------------------------------------------------------------------

def _bn_lrelu(y, gamma, beta):
    """InPlaceABN (batch stats, train mode) + leaky_relu(0.01), one-pass stats
    with the affine folded into scale/shift.  y: [M, C] f32."""
    inv_m = 1.0 / y.shape[0]
    mean = jnp.sum(y, axis=0, keepdims=True) * inv_m            # [1, C]
    ex2 = jnp.sum(y * y, axis=0, keepdims=True) * inv_m         # [1, C]
    var = ex2 - mean * mean                                     # biased var
    scale = gamma * jax.lax.rsqrt(var + _EPS_BN)                # [1, C]
    shift = beta - mean * scale                                 # [1, C]
    z = y * scale + shift
    return jnp.where(z >= 0, z, _LRELU_SLOPE * z)


def _downblock_kernel(cols_ref, w_ref, gamma_ref, beta_ref, o_ref):
    """DownBlock: conv-as-matmul (bf16 MXU, f32 acc) + InPlaceABN, fused.
    Output written back in bf16 (lane-dense) to halve inter-layer HBM traffic."""
    y = jnp.dot(cols_ref[...], w_ref[...], preferred_element_type=jnp.float32)
    z = _bn_lrelu(y, gamma_ref[...], beta_ref[...])
    o_ref[...] = z.astype(o_ref.dtype)


def _downblock_final_kernel(cols_ref, w_ref, gamma_ref, beta_ref, wf_ref,
                            o_ref, t_ref, *, batch, feat_sz, out_sz):
    """Last DownBlock + final 4x4/s1/p0 conv (Cout=1), fused in one kernel."""
    # --- DownBlock: matmul + InPlaceABN + leaky ---
    y = jnp.dot(cols_ref[...], w_ref[...], preferred_element_type=jnp.float32)
    z = _bn_lrelu(y, gamma_ref[...], beta_ref[...])             # [M, C] f32

    # --- Final conv, stage 1: contract channels on the MXU.
    # One [M, C] x [C, 16] matmul; lane k of the result is conv tap k = i*4+j.
    t = jnp.dot(z.astype(wf_ref.dtype), wf_ref[...],
                preferred_element_type=jnp.float32)             # [M, 16]
    # Single NHWC store of the tap map into a small VMEM scratch (no Python
    # per-row staging loop).  feat_sz=8 keeps the store sublane-aligned.
    t_ref[...] = t.reshape(batch, feat_sz, feat_sz, 16)

    # --- Final conv, stage 2: accumulate the 16 shifted (out_sz x out_sz)
    # windows with lane-aligned one-hot masks; a single 16-lane reduction at
    # the end (no per-tap cross-lane reduce over C, no HBM round trip).
    lane = jax.lax.broadcasted_iota(jnp.int32, (1, 1, 1, 16), 3)
    acc = jnp.zeros((batch, out_sz, out_sz, 16), jnp.float32)
    for i in range(4):
        for j in range(4):
            win = t_ref[:, pl.ds(i, out_sz), pl.ds(j, out_sz), :]   # [B, o, o, 16]
            acc = acc + jnp.where(lane == (i * 4 + j), win, 0.0)
    o_ref[...] = jnp.sum(acc, axis=-1)                          # [B, o, o] f32


# ---------------------------------------------------------------------------
# pallas_call wrappers (grid-less: working set <6 MiB at demo shapes, and
# InPlaceABN needs full-batch statistics -- see header TODO for the tiled plan)
# ---------------------------------------------------------------------------

def _downblock_call(cols, wmat, gamma, beta):
    M, K = cols.shape
    C = wmat.shape[1]
    return pl.pallas_call(
        _downblock_kernel,
        out_shape=jax.ShapeDtypeStruct((M, C), jnp.bfloat16),    # bf16 write-back
        in_specs=[_vmem()] * 4,
        out_specs=_vmem(),
        cost_estimate=pl.CostEstimate(
            flops=2 * M * K * C + 6 * M * C,
            transcendentals=C,
            bytes_accessed=(M * K + K * C + M * C) * 2 + 8 * C),
    )(cols, wmat, gamma, beta)


def _down_final_call(cols, wmat, gamma, beta, wf_t, *, batch, feat_sz, out_sz):
    M, K = cols.shape
    C = wmat.shape[1]
    kern = functools.partial(_downblock_final_kernel,
                             batch=batch, feat_sz=feat_sz, out_sz=out_sz)
    return pl.pallas_call(
        kern,
        out_shape=jax.ShapeDtypeStruct((batch, out_sz, out_sz), jnp.float32),
        in_specs=[_vmem()] * 5,
        out_specs=_vmem(),
        scratch_shapes=[pltpu.VMEM((batch, feat_sz, feat_sz, 16), jnp.float32)],
        cost_estimate=pl.CostEstimate(
            flops=2 * M * K * C + 6 * M * C + 2 * M * C * 16
                  + 32 * batch * out_sz * out_sz,
            transcendentals=C,
            bytes_accessed=(M * K + K * C + M * C + C * 16) * 2
                           + batch * out_sz * out_sz * 4),
    )(cols, wmat, gamma, beta, wf_t)


# ---------------------------------------------------------------------------
# Plain-JAX glue: NHWC im2col (bf16, wrapper-side only for layer inputs; the
# last block's intermediate output never leaves VMEM thanks to the fused head).
# ---------------------------------------------------------------------------

def _im2col_nhwc(x, kh, kw, stride, pad):
    B, H, W, C = x.shape
    if pad:
        x = jnp.pad(x, ((0, 0), (pad, pad), (pad, pad), (0, 0)))
    Ho = (H + 2 * pad - kh) // stride + 1
    Wo = (W + 2 * pad - kw) // stride + 1
    taps = [x[:, i:i + stride * Ho:stride, j:j + stride * Wo:stride, :]
            for i in range(kh) for j in range(kw)]
    cols = jnp.stack(taps, axis=3)                       # [B, Ho, Wo, kh*kw, C]
    cols = cols.reshape(B * Ho * Wo, kh * kw * C)        # tap-major, c fast
    return cols, B, Ho, Wo


# ---------------------------------------------------------------------------
# Parameter setup (spectral_norm folding is parameter prep, done in plain JAX)
# ---------------------------------------------------------------------------

def _spectral_normalize(w, key, eps=1e-12):
    cout = w.shape[0]
    wmat = w.reshape(cout, -1)
    u = jax.random.normal(key, (cout,), jnp.float32)
    u = u / (jnp.linalg.norm(u) + eps)
    v = wmat.T @ u
    v = v / (jnp.linalg.norm(v) + eps)
    u = wmat @ v
    u = u / (jnp.linalg.norm(u) + eps)
    sigma = u @ (wmat @ v)
    return w / sigma


def init_single_disc(key, nc=None, ndf=None, start_sz=256, end_sz=8):
    if start_sz not in NFC_MIDAS:
        start_sz = min(NFC_MIDAS.keys(), key=lambda s: abs(s - start_sz))
    nfc = {k: (v if ndf is None else ndf) for k, v in NFC_MIDAS.items()}
    if nc is not None:
        nfc[start_sz] = nc

    down = []
    sz = start_sz
    while sz > end_sz:
        key, k1, k2 = jax.random.split(key, 3)
        cin, cout = nfc[sz], nfc[sz // 2]
        w = jax.random.normal(k1, (cout, cin, 4, 4), jnp.float32) * 0.05
        w = _spectral_normalize(w, k2)
        wmat = w.transpose(2, 3, 1, 0).reshape(16 * cin, cout)   # [(i,j,c), cout]
        down.append({"w": wmat.astype(jnp.bfloat16),
                     "gamma": jnp.ones((1, cout), jnp.float32),
                     "beta": jnp.zeros((1, cout), jnp.float32)})
        sz //= 2

    key, k1, k2 = jax.random.split(key, 3)
    w = jax.random.normal(k1, (1, nfc[end_sz], 4, 4), jnp.float32) * 0.05
    w = _spectral_normalize(w, k2)
    wf_t = w[0].reshape(nfc[end_sz], 16).astype(jnp.bfloat16)    # [c, (i*4+j)]
    return {"down": down, "final": wf_t}


# ---------------------------------------------------------------------------
# SingleDisc forward
# ---------------------------------------------------------------------------

def single_disc_forward(params, x_nchw):
    # NHWC once at the boundary; bf16 once at the boundary (all inter-layer
    # activations / im2col stay bf16; f32 only inside the kernels).
    x = jnp.transpose(x_nchw, (0, 2, 3, 1)).astype(jnp.bfloat16)
    down = params["down"]
    assert len(down) >= 1, "demo configs always have start_sz > end_sz"

    # All but the last DownBlock: one fused pallas_call each, bf16 out.
    for layer in down[:-1]:
        cols, B, Ho, Wo = _im2col_nhwc(x, 4, 4, 2, 1)
        z = _downblock_call(cols, layer["w"], layer["gamma"], layer["beta"])
        x = z.reshape(B, Ho, Wo, -1)                   # metadata-only reshape

    # Last DownBlock + final conv fused into a single kernel.
    last = down[-1]
    B, S = x.shape[0], x.shape[1]
    feat_sz, out_sz = S // 2, S // 2 - 3
    cols, _, _, _ = _im2col_nhwc(x, 4, 4, 2, 1)
    out = _down_final_call(cols, last["w"], last["gamma"], last["beta"],
                           params["final"], batch=B, feat_sz=feat_sz, out_sz=out_sz)
    return out[:, None, :, :]                          # [B, 1, 5, 5] like torch module


# ---------------------------------------------------------------------------
# Plain-JAX reference (classic two-pass BN, f32 intermediates, HIGHEST final
# conv) — an independent numerical check of the fused kernels.
# ---------------------------------------------------------------------------

def _reference_forward(params, x_nchw):
    x = jnp.transpose(x_nchw, (0, 2, 3, 1)).astype(jnp.float32)
    for layer in params["down"]:
        cols, B, Ho, Wo = _im2col_nhwc(x, 4, 4, 2, 1)
        y = jnp.dot(cols.astype(jnp.bfloat16), layer["w"],
                    preferred_element_type=jnp.float32)
        mean = jnp.mean(y, axis=0, keepdims=True)
        yc = y - mean
        var = jnp.mean(yc * yc, axis=0, keepdims=True)
        z = yc * jax.lax.rsqrt(var + _EPS_BN) * layer["gamma"] + layer["beta"]
        z = jnp.where(z >= 0, z, _LRELU_SLOPE * z)
        x = z.reshape(B, Ho, Wo, -1)
    cols, B, Ho, Wo = _im2col_nhwc(x, 4, 4, 1, 0)
    # params["final"] is [C, 16] (tap-minor); reference cols are tap-major, c fast.
    wf_flat = jnp.asarray(params["final"], jnp.float32).T.reshape(-1, 1)
    out = jnp.dot(cols, wf_flat, precision=jax.lax.Precision.HIGHEST)
    return out.reshape(B, Ho, Wo)[:, None, :, :]


# ---------------------------------------------------------------------------
# Demo
# ---------------------------------------------------------------------------

if __name__ == "__main__":
    key = jax.random.PRNGKey(0)
    k_p1, k_x1, k_p2, k_x2 = jax.random.split(key, 4)
    fwd = jax.jit(single_disc_forward)

    # Config 1: SingleDisc(nc=4, start_sz=16, end_sz=8) -> whole forward = 1 pallas_call.
    params1 = init_single_disc(k_p1, nc=4, start_sz=16, end_sz=8)
    x1 = jax.random.uniform(k_x1, (2, 4, 16, 16), jnp.float32, minval=-1.0, maxval=1.0)
    out1 = jax.block_until_ready(fwd(params1, x1))
    ref1 = _reference_forward(params1, x1)
    assert out1.shape == (2, 1, 5, 5), out1.shape
    assert bool(jnp.all(jnp.isfinite(out1)))
    err1 = float(jnp.max(jnp.abs(out1 - ref1)))
    assert err1 < 5e-2, f"config1 mismatch: {err1}"

    # Config 2: SingleDisc(nc=4, start_sz=32, end_sz=8) -> 2 DownBlocks = 2 pallas_calls.
    params2 = init_single_disc(k_p2, nc=4, start_sz=32, end_sz=8)
    x2 = jax.random.uniform(k_x2, (2, 4, 32, 32), jnp.float32, minval=-1.0, maxval=1.0)
    out2 = jax.block_until_ready(fwd(params2, x2))
    ref2 = _reference_forward(params2, x2)
    assert out2.shape == (2, 1, 5, 5), out2.shape
    assert bool(jnp.all(jnp.isfinite(out2)))
    err2 = float(jnp.max(jnp.abs(out2 - ref2)))
    assert err2 < 5e-2, f"config2 mismatch: {err2}"

    print("KERNEL_OK")
</pallas_src>

<mosaic_0001>
module attributes {stable_mosaic.version = 11 : i64} {
  func.func @_downblock_final_kernel(%arg0: memref<128x64xbf16, #tpu.memory_space<vmem>>, %arg1: memref<64x512xbf16, #tpu.memory_space<vmem>>, %arg2: memref<1x512xf32, #tpu.memory_space<vmem>>, %arg3: memref<1x512xf32, #tpu.memory_space<vmem>>, %arg4: memref<512x16xbf16, #tpu.memory_space<vmem>>, %arg5: memref<2x5x5xf32, #tpu.memory_space<vmem>>, %arg6: memref<2x8x8x16xf32, #tpu.memory_space<vmem>>) attributes {dimension_semantics = [], scalar_prefetch = 0 : i64, scratch_operands = 1 : i64, tpu.core_type = #tpu.core_type<tc>} {
    %c0 = arith.constant 0 : index
    %c0_0 = arith.constant 0 : index
    %0 = vector.load %arg0[%c0, %c0_0] : memref<128x64xbf16, #tpu.memory_space<vmem>>, vector<128x64xbf16>
    %c0_1 = arith.constant 0 : index
    %c0_2 = arith.constant 0 : index
    %1 = vector.load %arg1[%c0_1, %c0_2] : memref<64x512xbf16, #tpu.memory_space<vmem>>, vector<64x512xbf16>
    %cst = arith.constant dense<0.000000e+00> : vector<128x512xf32>
    %2 = tpu.matmul %0, %1, %cst {dimension_numbers = #tpu.dot_dimension_numbers<[1], [0], [0], [1], [0, 0, 1, 1], [], []>} : vector<128x64xbf16>, vector<64x512xbf16>, vector<128x512xf32> -> vector<128x512xf32>
    %c0_3 = arith.constant 0 : index
    %c0_4 = arith.constant 0 : index
    %3 = vector.load %arg2[%c0_3, %c0_4] : memref<1x512xf32, #tpu.memory_space<vmem>>, vector<1x512xf32>
    %c0_5 = arith.constant 0 : index
    %c0_6 = arith.constant 0 : index
    %4 = vector.load %arg3[%c0_5, %c0_6] : memref<1x512xf32, #tpu.memory_space<vmem>>, vector<1x512xf32>
    %cst_7 = arith.constant dense<0.000000e+00> : vector<512xf32>
    %5 = vector.multi_reduction <add>, %2, %cst_7 [0] : vector<128x512xf32> to vector<512xf32>
    %6 = vector.shape_cast %5 : vector<512xf32> to vector<1x512xf32>
    %cst_8 = arith.constant 7.812500e-03 : f32
    %7 = vector.broadcast %cst_8 : f32 to vector<1x512xf32>
    %8 = arith.mulf %6, %7 : vector<1x512xf32>
    %9 = arith.mulf %2, %2 : vector<128x512xf32>
    %cst_9 = arith.constant dense<0.000000e+00> : vector<512xf32>
    %10 = vector.multi_reduction <add>, %9, %cst_9 [0] : vector<128x512xf32> to vector<512xf32>
    %11 = vector.shape_cast %10 : vector<512xf32> to vector<1x512xf32>
    %cst_10 = arith.constant 7.812500e-03 : f32
    %12 = vector.broadcast %cst_10 : f32 to vector<1x512xf32>
    %13 = arith.mulf %11, %12 : vector<1x512xf32>
    %14 = arith.mulf %8, %8 : vector<1x512xf32>
    %15 = arith.subf %13, %14 : vector<1x512xf32>
    %cst_11 = arith.constant 9.99999974E-6 : f32
    %16 = vector.broadcast %cst_11 : f32 to vector<1x512xf32>
    %17 = arith.addf %15, %16 : vector<1x512xf32>
    %18 = math.rsqrt %17 : vector<1x512xf32>
    %19 = arith.mulf %3, %18 : vector<1x512xf32>
    %20 = arith.mulf %8, %19 : vector<1x512xf32>
    %21 = arith.subf %4, %20 : vector<1x512xf32>
    %22 = vector.broadcast %19 : vector<1x512xf32> to vector<128x512xf32>
    %23 = arith.mulf %2, %22 : vector<128x512xf32>
    %24 = vector.broadcast %21 : vector<1x512xf32> to vector<128x512xf32>
    %25 = arith.addf %23, %24 : vector<128x512xf32>
    %cst_12 = arith.constant 0.000000e+00 : f32
    %26 = vector.broadcast %cst_12 : f32 to vector<128x512xf32>
    %27 = arith.cmpf oge, %25, %26 : vector<128x512xf32>
    %cst_13 = arith.constant 0.00999999977 : f32
    %28 = vector.broadcast %cst_13 : f32 to vector<128x512xf32>
    %29 = arith.mulf %28, %25 : vector<128x512xf32>
    %30 = arith.select %27, %25, %29 : vector<128x512xi1>, vector<128x512xf32>
    %31 = arith.truncf %30 : vector<128x512xf32> to vector<128x512xbf16>
    %c0_14 = arith.constant 0 : index
    %c0_15 = arith.constant 0 : index
    %32 = vector.load %arg4[%c0_14, %c0_15] : memref<512x16xbf16, #tpu.memory_space<vmem>>, vector<512x16xbf16>
    %cst_16 = arith.constant dense<0.000000e+00> : vector<128x16xf32>
    %33 = tpu.matmul %31, %32, %cst_16 {dimension_numbers = #tpu.dot_dimension_numbers<[1], [0], [0], [1], [0, 0, 1, 1], [], []>} : vector<128x512xbf16>, vector<512x16xbf16>, vector<128x16xf32> -> vector<128x16xf32>
    %34 = vector.shape_cast %33 : vector<128x16xf32> to vector<2x8x8x16xf32>
    %c0_17 = arith.constant 0 : index
    %c0_18 = arith.constant 0 : index
    %c0_19 = arith.constant 0 : index
    %c0_20 = arith.constant 0 : index
    %35 = vector.load %arg6[%c0_17, %c0_18, %c0_19, %c0_20] : memref<2x8x8x16xf32, #tpu.memory_space<vmem>>, vector<2x8x8x16xf32>
    tpu.vector_store %arg6[%c0_17, %c0_18, %c0_19, %c0_20], %34 {strides = array<i32>} : memref<2x8x8x16xf32, #tpu.memory_space<vmem>>, vector<2x8x8x16xf32>,
    %36 = tpu.iota {dimensions = array<i32: 3>} : vector<1x1x1x16xi32>
    %cst_21 = arith.constant 0.000000e+00 : f32
    %37 = vector.broadcast %cst_21 : f32 to vector<2x5x5x16xf32>
    %c0_22 = arith.constant 0 : index
    %c0_23 = arith.constant 0 : index
    %c0_24 = arith.constant 0 : index
    %c0_25 = arith.constant 0 : index
    %38 = vector.load %arg6[%c0_22, %c0_23, %c0_24, %c0_25] : memref<2x8x8x16xf32, #tpu.memory_space<vmem>>, vector<2x5x5x16xf32>
    %c0_i32 = arith.constant 0 : i32
    %39 = vector.broadcast %c0_i32 : i32 to vector<1x1x1x16xi32>
    %40 = arith.cmpi eq, %36, %39 : vector<1x1x1x16xi32>
    %cst_26 = arith.constant 0.000000e+00 : f32
    %41 = vector.shape_cast %40 : vector<1x1x1x16xi1> to vector<1x1x1x16xi1>
    %42 = vector.broadcast %41 : vector<1x1x1x16xi1> to vector<2x5x5x16xi1>
    %43 = vector.broadcast %cst_26 : f32 to vector<2x5x5x16xf32>
    %44 = arith.select %42, %38, %43 : vector<2x5x5x16xi1>, vector<2x5x5x16xf32>
    %45 = arith.addf %37, %44 : vector<2x5x5x16xf32>
    %c0_27 = arith.constant 0 : index
    %c0_28 = arith.constant 0 : index
    %c1 = arith.constant 1 : index
    %c0_29 = arith.constant 0 : index
    %46 = vector.load %arg6[%c0_27, %c0_28, %c1, %c0_29] : memref<2x8x8x16xf32, #tpu.memory_space<vmem>>, vector<2x5x5x16xf32>
    %c1_i32 = arith.constant 1 : i32
    %47 = vector.broadcast %c1_i32 : i32 to vector<1x1x1x16xi32>
    %48 = arith.cmpi eq, %36, %47 : vector<1x1x1x16xi32>
    %cst_30 = arith.constant 0.000000e+00 : f32
    %49 = vector.shape_cast %48 : vector<1x1x1x16xi1> to vector<1x1x1x16xi1>
    %50 = vector.broadcast %49 : vector<1x1x1x16xi1> to vector<2x5x5x16xi1>
    %51 = vector.broadcast %cst_30 : f32 to vector<2x5x5x16xf32>
    %52 = arith.select %50, %46, %51 : vector<2x5x5x16xi1>, vector<2x5x5x16xf32>
    %53 = arith.addf %45, %52 : vector<2x5x5x16xf32>
    %c0_31 = arith.constant 0 : index
    %c0_32 = arith.constant 0 : index
    %c2 = arith.constant 2 : index
    %c0_33 = arith.constant 0 : index
    %54 = vector.load %arg6[%c0_31, %c0_32, %c2, %c0_33] : memref<2x8x8x16xf32, #tpu.memory_space<vmem>>, vector<2x5x5x16xf32>
    %c2_i32 = arith.constant 2 : i32
    %55 = vector.broadcast %c2_i32 : i32 to vector<1x1x1x16xi32>
    %56 = arith.cmpi eq, %36, %55 : vector<1x1x1x16xi32>
    %cst_34 = arith.constant 0.000000e+00 : f32
    %57 = vector.shape_cast %56 : vector<1x1x1x16xi1> to vector<1x1x1x16xi1>
    %58 = vector.broadcast %57 : vector<1x1x1x16xi1> to vector<2x5x5x16xi1>
    %59 = vector.broadcast %cst_34 : f32 to vector<2x5x5x16xf32>
    %60 = arith.select %58, %54, %59 : vector<2x5x5x16xi1>, vector<2x5x5x16xf32>
    %61 = arith.addf %53, %60 : vector<2x5x5x16xf32>
    %c0_35 = arith.constant 0 : index
    %c0_36 = arith.constant 0 : index
    %c3 = arith.constant 3 : index
    %c0_37 = arith.constant 0 : index
    %62 = vector.load %arg6[%c0_35, %c0_36, %c3, %c0_37] : memref<2x8x8x16xf32, #tpu.memory_space<vmem>>, vector<2x5x5x16xf32>
    %c3_i32 = arith.constant 3 : i32
    %63 = vector.broadcast %c3_i32 : i32 to vector<1x1x1x16xi32>
    %64 = arith.cmpi eq, %36, %63 : vector<1x1x1x16xi32>
    %cst_38 = arith.constant 0.000000e+00 : f32
    %65 = vector.shape_cast %64 : vector<1x1x1x16xi1> to vector<1x1x1x16xi1>
    %66 = vector.broadcast %65 : vector<1x1x1x16xi1> to vector<2x5x5x16xi1>
    %67 = vector.broadcast %cst_38 : f32 to vector<2x5x5x16xf32>
    %68 = arith.select %66, %62, %67 : vector<2x5x5x16xi1>, vector<2x5x5x16xf32>
    %69 = arith.addf %61, %68 : vector<2x5x5x16xf32>
    %c0_39 = arith.constant 0 : index
    %c1_40 = arith.constant 1 : index
    %c0_41 = arith.constant 0 : index
    %c0_42 = arith.constant 0 : index
    %70 = vector.load %arg6[%c0_39, %c1_40, %c0_41, %c0_42] : memref<2x8x8x16xf32, #tpu.memory_space<vmem>>, vector<2x5x5x16xf32>
    %c4_i32 = arith.constant 4 : i32
    %71 = vector.broadcast %c4_i32 : i32 to vector<1x1x1x16xi32>
    %72 = arith.cmpi eq, %36, %71 : vector<1x1x1x16xi32>
    %cst_43 = arith.constant 0.000000e+00 : f32
    %73 = vector.shape_cast %72 : vector<1x1x1x16xi1> to vector<1x1x1x16xi1>
    %74 = vector.broadcast %73 : vector<1x1x1x16xi1> to vector<2x5x5x16xi1>
    %75 = vector.broadcast %cst_43 : f32 to vector<2x5x5x16xf32>
    %76 = arith.select %74, %70, %75 : vector<2x5x5x16xi1>, vector<2x5x5x16xf32>
    %77 = arith.addf %69, %76 : vector<2x5x5x16xf32>
    %c0_44 = arith.constant 0 : index
    %c1_45 = arith.constant 1 : index
    %c1_46 = arith.constant 1 : index
    %c0_47 = arith.constant 0 : index
    %78 = vector.load %arg6[%c0_44, %c1_45, %c1_46, %c0_47] : memref<2x8x8x16xf32, #tpu.memory_space<vmem>>, vector<2x5x5x16xf32>
    %c5_i32 = arith.constant 5 : i32
    %79 = vector.broadcast %c5_i32 : i32 to vector<1x1x1x16xi32>
    %80 = arith.cmpi eq, %36, %79 : vector<1x1x1x16xi32>
    %cst_48 = arith.constant 0.000000e+00 : f32
    %81 = vector.shape_cast %80 : vector<1x1x1x16xi1> to vector<1x1x1x16xi1>
    %82 = vector.broadcast %81 : vector<1x1x1x16xi1> to vector<2x5x5x16xi1>
    %83 = vector.broadcast %cst_48 : f32 to vector<2x5x5x16xf32>
    %84 = arith.select %82, %78, %83 : vector<2x5x5x16xi1>, vector<2x5x5x16xf32>
    %85 = arith.addf %77, %84 : vector<2x5x5x16xf32>
    %c0_49 = arith.constant 0 : index
    %c1_50 = arith.constant 1 : index
    %c2_51 = arith.constant 2 : index
    %c0_52 = arith.constant 0 : index
    %86 = vector.load %arg6[%c0_49, %c1_50, %c2_51, %c0_52] : memref<2x8x8x16xf32, #tpu.memory_space<vmem>>, vector<2x5x5x16xf32>
    %c6_i32 = arith.constant 6 : i32
    %87 = vector.broadcast %c6_i32 : i32 to vector<1x1x1x16xi32>
    %88 = arith.cmpi eq, %36, %87 : vector<1x1x1x16xi32>
    %cst_53 = arith.constant 0.000000e+00 : f32
    %89 = vector.shape_cast %88 : vector<1x1x1x16xi1> to vector<1x1x1x16xi1>
    %90 = vector.broadcast %89 : vector<1x1x1x16xi1> to vector<2x5x5x16xi1>
    %91 = vector.broadcast %cst_53 : f32 to vector<2x5x5x16xf32>
    %92 = arith.select %90, %86, %91 : vector<2x5x5x16xi1>, vector<2x5x5x16xf32>
    %93 = arith.addf %85, %92 : vector<2x5x5x16xf32>
    %c0_54 = arith.constant 0 : index
    %c1_55 = arith.constant 1 : index
    %c3_56 = arith.constant 3 : index
    %c0_57 = arith.constant 0 : index
    %94 = vector.load %arg6[%c0_54, %c1_55, %c3_56, %c0_57] : memref<2x8x8x16xf32, #tpu.memory_space<vmem>>, vector<2x5x5x16xf32>
    %c7_i32 = arith.constant 7 : i32
    %95 = vector.broadcast %c7_i32 : i32 to vector<1x1x1x16xi32>
    %96 = arith.cmpi eq, %36, %95 : vector<1x1x1x16xi32>
    %cst_58 = arith.constant 0.000000e+00 : f32
    %97 = vector.shape_cast %96 : vector<1x1x1x16xi1> to vector<1x1x1x16xi1>
    %98 = vector.broadcast %97 : vector<1x1x1x16xi1> to vector<2x5x5x16xi1>
    %99 = vector.broadcast %cst_58 : f32 to vector<2x5x5x16xf32>
    %100 = arith.select %98, %94, %99 : vector<2x5x5x16xi1>, vector<2x5x5x16xf32>
    %101 = arith.addf %93, %100 : vector<2x5x5x16xf32>
    %c0_59 = arith.constant 0 : index
    %c2_60 = arith.constant 2 : index
    %c0_61 = arith.constant 0 : index
    %c0_62 = arith.constant 0 : index
    %102 = vector.load %arg6[%c0_59, %c2_60, %c0_61, %c0_62] : memref<2x8x8x16xf32, #tpu.memory_space<vmem>>, vector<2x5x5x16xf32>
    %c8_i32 = arith.constant 8 : i32
    %103 = vector.broadcast %c8_i32 : i32 to vector<1x1x1x16xi32>
    %104 = arith.cmpi eq, %36, %103 : vector<1x1x1x16xi32>
    %cst_63 = arith.constant 0.000000e+00 : f32
    %105 = vector.shape_cast %104 : vector<1x1x1x16xi1> to vector<1x1x1x16xi1>
    %106 = vector.broadcast %105 : vector<1x1x1x16xi1> to vector<2x5x5x16xi1>
    %107 = vector.broadcast %cst_63 : f32 to vector<2x5x5x16xf32>
    %108 = arith.select %106, %102, %107 : vector<2x5x5x16xi1>, vector<2x5x5x16xf32>
    %109 = arith.addf %101, %108 : vector<2x5x5x16xf32>
    %c0_64 = arith.constant 0 : index
    %c2_65 = arith.constant 2 : index
    %c1_66 = arith.constant 1 : index
    %c0_67 = arith.constant 0 : index
    %110 = vector.load %arg6[%c0_64, %c2_65, %c1_66, %c0_67] : memref<2x8x8x16xf32, #tpu.memory_space<vmem>>, vector<2x5x5x16xf32>
    %c9_i32 = arith.constant 9 : i32
    %111 = vector.broadcast %c9_i32 : i32 to vector<1x1x1x16xi32>
    %112 = arith.cmpi eq, %36, %111 : vector<1x1x1x16xi32>
    %cst_68 = arith.constant 0.000000e+00 : f32
    %113 = vector.shape_cast %112 : vector<1x1x1x16xi1> to vector<1x1x1x16xi1>
    %114 = vector.broadcast %113 : vector<1x1x1x16xi1> to vector<2x5x5x16xi1>
    %115 = vector.broadcast %cst_68 : f32 to vector<2x5x5x16xf32>
    %116 = arith.select %114, %110, %115 : vector<2x5x5x16xi1>, vector<2x5x5x16xf32>
    %117 = arith.addf %109, %116 : vector<2x5x5x16xf32>
    %c0_69 = arith.constant 0 : index
    %c2_70 = arith.constant 2 : index
    %c2_71 = arith.constant 2 : index
    %c0_72 = arith.constant 0 : index
    %118 = vector.load %arg6[%c0_69, %c2_70, %c2_71, %c0_72] : memref<2x8x8x16xf32, #tpu.memory_space<vmem>>, vector<2x5x5x16xf32>
    %c10_i32 = arith.constant 10 : i32
    %119 = vector.broadcast %c10_i32 : i32 to vector<1x1x1x16xi32>
    %120 = arith.cmpi eq, %36, %119 : vector<1x1x1x16xi32>
    %cst_73 = arith.constant 0.000000e+00 : f32
    %121 = vector.shape_cast %120 : vector<1x1x1x16xi1> to vector<1x1x1x16xi1>
    %122 = vector.broadcast %121 : vector<1x1x1x16xi1> to vector<2x5x5x16xi1>
    %123 = vector.broadcast %cst_73 : f32 to vector<2x5x5x16xf32>
    %124 = arith.select %122, %118, %123 : vector<2x5x5x16xi1>, vector<2x5x5x16xf32>
    %125 = arith.addf %117, %124 : vector<2x5x5x16xf32>
    %c0_74 = arith.constant 0 : index
    %c2_75 = arith.constant 2 : index
    %c3_76 = arith.constant 3 : index
    %c0_77 = arith.constant 0 : index
    %126 = vector.load %arg6[%c0_74, %c2_75, %c3_76, %c0_77] : memref<2x8x8x16xf32, #tpu.memory_space<vmem>>, vector<2x5x5x16xf32>
    %c11_i32 = arith.constant 11 : i32
    %127 = vector.broadcast %c11_i32 : i32 to vector<1x1x1x16xi32>
    %128 = arith.cmpi eq, %36, %127 : vector<1x1x1x16xi32>
    %cst_78 = arith.constant 0.000000e+00 : f32
    %129 = vector.shape_cast %128 : vector<1x1x1x16xi1> to vector<1x1x1x16xi1>
    %130 = vector.broadcast %129 : vector<1x1x1x16xi1> to vector<2x5x5x16xi1>
    %131 = vector.broadcast %cst_78 : f32 to vector<2x5x5x16xf32>
    %132 = arith.select %130, %126, %131 : vector<2x5x5x16xi1>, vector<2x5x5x16xf32>
    %133 = arith.addf %125, %132 : vector<2x5x5x16xf32>
    %c0_79 = arith.constant 0 : index
    %c3_80 = arith.constant 3 : index
    %c0_81 = arith.constant 0 : index
    %c0_82 = arith.constant 0 : index
    %134 = vector.load %arg6[%c0_79, %c3_80, %c0_81, %c0_82] : memref<2x8x8x16xf32, #tpu.memory_space<vmem>>, vector<2x5x5x16xf32>
    %c12_i32 = arith.constant 12 : i32
    %135 = vector.broadcast %c12_i32 : i32 to vector<1x1x1x16xi32>
    %136 = arith.cmpi eq, %36, %135 : vector<1x1x1x16xi32>
    %cst_83 = arith.constant 0.000000e+00 : f32
    %137 = vector.shape_cast %136 : vector<1x1x1x16xi1> to vector<1x1x1x16xi1>
    %138 = vector.broadcast %137 : vector<1x1x1x16xi1> to vector<2x5x5x16xi1>
    %139 = vector.broadcast %cst_83 : f32 to vector<2x5x5x16xf32>
    %140 = arith.select %138, %134, %139 : vector<2x5x5x16xi1>, vector<2x5x5x16xf32>
    %141 = arith.addf %133, %140 : vector<2x5x5x16xf32>
    %c0_84 = arith.constant 0 : index
    %c3_85 = arith.constant 3 : index
    %c1_86 = arith.constant 1 : index
    %c0_87 = arith.constant 0 : index
    %142 = vector.load %arg6[%c0_84, %c3_85, %c1_86, %c0_87] : memref<2x8x8x16xf32, #tpu.memory_space<vmem>>, vector<2x5x5x16xf32>
    %c13_i32 = arith.constant 13 : i32
    %143 = vector.broadcast %c13_i32 : i32 to vector<1x1x1x16xi32>
    %144 = arith.cmpi eq, %36, %143 : vector<1x1x1x16xi32>
    %cst_88 = arith.constant 0.000000e+00 : f32
    %145 = vector.shape_cast %144 : vector<1x1x1x16xi1> to vector<1x1x1x16xi1>
    %146 = vector.broadcast %145 : vector<1x1x1x16xi1> to vector<2x5x5x16xi1>
    %147 = vector.broadcast %cst_88 : f32 to vector<2x5x5x16xf32>
    %148 = arith.select %146, %142, %147 : vector<2x5x5x16xi1>, vector<2x5x5x16xf32>
    %149 = arith.addf %141, %148 : vector<2x5x5x16xf32>
    %c0_89 = arith.constant 0 : index
    %c3_90 = arith.constant 3 : index
    %c2_91 = arith.constant 2 : index
    %c0_92 = arith.constant 0 : index
    %150 = vector.load %arg6[%c0_89, %c3_90, %c2_91, %c0_92] : memref<2x8x8x16xf32, #tpu.memory_space<vmem>>, vector<2x5x5x16xf32>
    %c14_i32 = arith.constant 14 : i32
    %151 = vector.broadcast %c14_i32 : i32 to vector<1x1x1x16xi32>
    %152 = arith.cmpi eq, %36, %151 : vector<1x1x1x16xi32>
    %cst_93 = arith.constant 0.000000e+00 : f32
    %153 = vector.shape_cast %152 : vector<1x1x1x16xi1> to vector<1x1x1x16xi1>
    %154 = vector.broadcast %153 : vector<1x1x1x16xi1> to vector<2x5x5x16xi1>
    %155 = vector.broadcast %cst_93 : f32 to vector<2x5x5x16xf32>
    %156 = arith.select %154, %150, %155 : vector<2x5x5x16xi1>, vector<2x5x5x16xf32>
    %157 = arith.addf %149, %156 : vector<2x5x5x16xf32>
    %c0_94 = arith.constant 0 : index
    %c3_95 = arith.constant 3 : index
    %c3_96 = arith.constant 3 : index
    %c0_97 = arith.constant 0 : index
    %158 = vector.load %arg6[%c0_94, %c3_95, %c3_96, %c0_97] : memref<2x8x8x16xf32, #tpu.memory_space<vmem>>, vector<2x5x5x16xf32>
    %c15_i32 = arith.constant 15 : i32
    %159 = vector.broadcast %c15_i32 : i32 to vector<1x1x1x16xi32>
    %160 = arith.cmpi eq, %36, %159 : vector<1x1x1x16xi32>
    %cst_98 = arith.constant 0.000000e+00 : f32
    %161 = vector.shape_cast %160 : vector<1x1x1x16xi1> to vector<1x1x1x16xi1>
    %162 = vector.broadcast %161 : vector<1x1x1x16xi1> to vector<2x5x5x16xi1>
    %163 = vector.broadcast %cst_98 : f32 to vector<2x5x5x16xf32>
    %164 = arith.select %162, %158, %163 : vector<2x5x5x16xi1>, vector<2x5x5x16xf32>
    %165 = arith.addf %157, %164 : vector<2x5x5x16xf32>
    %cst_99 = arith.constant dense<0.000000e+00> : vector<2x5x5xf32>
    %166 = vector.multi_reduction <add>, %165, %cst_99 [3] : vector<2x5x5x16xf32> to vector<2x5x5xf32>
    %c0_100 = arith.constant 0 : index
    %c0_101 = arith.constant 0 : index
    %c0_102 = arith.constant 0 : index
    %167 = vector.load %arg5[%c0_100, %c0_101, %c0_102] : memref<2x5x5xf32, #tpu.memory_space<vmem>>, vector<2x5x5xf32>
    tpu.vector_store %arg5[%c0_100, %c0_101, %c0_102], %166 {strides = array<i32>} : memref<2x5x5xf32, #tpu.memory_space<vmem>>, vector<2x5x5xf32>,
    return
  }
}

</mosaic_0001>

<bundles_post_ra>
// kernel: single_disc_forward.1
= control target key start
LH: loop header
LB: loop body
LE: loop exit
PB: predicated region body
PF: predicated region fallthrough
CT: control target
= control target key end

     0   :  { %vm173_vm0 = vcmask 523264   ;;  %vm695_vm11 = vcmask 1040384   ;;  %vm3779_vm13 = vcmask 1042434   ;;  %vm699_vm15 = vcmask 1041408   ;;  %s3741_s1 = inlined_call_operand.vmem [shape: bf16[64,512], index: 1, kind: input, shape index: {}]   ;;  %s3742_s0 = inlined_call_operand.vmem [shape: bf16[128,64], index: 0, kind: input, shape index: {}]   ;;  %s3743_s4 = inlined_call_operand.vmem [shape: bf16[512,16], index: 4, kind: input, shape index: {}]   ;;  %s3744_s2 = inlined_call_operand.vmem [shape: f32[1,512], index: 2, kind: input, shape index: {}]   ;;  %s3745_s3 = inlined_call_operand.vmem [shape: f32[1,512], index: 3, kind: input, shape index: {}]   ;;  %s3746_s5 = inlined_call_operand.vmem [shape: f32[2,5,5], index: 5, kind: output, shape index: {}]  }
   0x1   :  { %v2244_v0 = vld [vmem:[%s3741_s1 + $0x60] sm:$0xf]  ;;  %v2440_v1 = vld [vmem:[%s3741_s1 + $0x6c] sm:$0xf0]  ;;  %v2438_v2 = vld [vmem:[%s3741_s1 + $0x64] sm:$0xf] }
   0x2   :  { %v2245_v3 = vor.u32 %v2440_v1, %v2244_v0  ;;  %v2246_v4 = vld [vmem:[%s3741_s1 + $0x70] sm:$0xf0]  ;;  %v2252_v5 = vld [vmem:[%s3741_s1 + $0x68] sm:$0xf]  ;;  %v2441_v6 = vld [vmem:[%s3741_s1 + $0x74] sm:$0xf0] }
   0x3   :  { %v2249_v7 = vor.u32 %v2438_v2, %v2246_v4  ;;  %v2253_v8 = vor.u32 %v2441_v6, %v2252_v5  ;;  %v2439_v9 = vld [vmem:[%s3741_s1 + $0x6c] sm:$0xf]  ;;  %v2254_v10 = vld [vmem:[%s3741_s1 + $0x78] sm:$0xf0]  ;;  %v2228_v11 = vld [vmem:[%s3741_s1 + $0x40] sm:$0xf] }
   0x4   :  { %202 = vmatpush.bf16.msra.mxu0 %v2245_v3  ;;  %v2257_v12 = vor.u32 %v2439_v9, %v2254_v10  ;;  %v2436_v13 = vld [vmem:[%s3741_s1 + $0x4c] sm:$0xf0]  ;;  %v2434_v14 = vld [vmem:[%s3741_s1 + $0x44] sm:$0xf]  ;;  %v2230_v15 = vld [vmem:[%s3741_s1 + $0x50] sm:$0xf0] }
   0x5   :  { %251 = vmatpush.bf16.msra.mxu1 %v2249_v7  ;;  %300 = vmatpush.bf16.msra.mxu2 %v2253_v8  ;;  %v2229_v16 = vor.u32 %v2436_v13, %v2228_v11  ;;  %v2233_v17 = vor.u32 %v2434_v14, %v2230_v15  ;;  %v2236_v18 = vld [vmem:[%s3741_s1 + $0x48] sm:$0xf]  ;;  %v2437_v19 = vld [vmem:[%s3741_s1 + $0x54] sm:$0xf0]  ;;  %v2435_v20 = vld [vmem:[%s3741_s1 + $0x4c] sm:$0xf] }
   0x6   :  { %349 = vmatpush.bf16.msra.mxu3 %v2257_v12  ;;  %v2237_v21 = vor.u32 %v2437_v19, %v2236_v18  ;;  %v2238_v22 = vld [vmem:[%s3741_s1 + $0x58] sm:$0xf0]  ;;  %v2212_v23 = vld [vmem:[%s3741_s1 + $0x20] sm:$0xf]  ;;  %v2432_v24 = vld [vmem:[%s3741_s1 + $0x2c] sm:$0xf0] }
   0x7   :  { %v2241_v25 = vor.u32 %v2435_v20, %v2238_v22  ;;  %v2430_v26 = vld [vmem:[%s3741_s1 + $0x24] sm:$0xf]  ;;  %v2214_v27 = vld [vmem:[%s3741_s1 + $0x30] sm:$0xf0]  ;;  %v2220_v28 = vld [vmem:[%s3741_s1 + $0x28] sm:$0xf]  ;;  %v2213_v29 = vor.u32 %v2432_v24, %v2212_v23 }
   0x8   :  { %203 = vmatpush.bf16.msra.mxu0 %v2229_v16  ;;  %v2433_v30 = vld [vmem:[%s3741_s1 + $0x34] sm:$0xf0]  ;;  %v2431_v31 = vld [vmem:[%s3741_s1 + $0x2c] sm:$0xf]  ;;  %v2222_v32 = vld [vmem:[%s3741_s1 + $0x38] sm:$0xf0]  ;;  %v2217_v33 = vor.u32 %v2430_v26, %v2214_v27 }
   0x9   :  { %252 = vmatpush.bf16.msra.mxu1 %v2233_v17  ;;  %301 = vmatpush.bf16.msra.mxu2 %v2237_v21  ;;  %v2221_v34 = vor.u32 %v2433_v30, %v2220_v28  ;;  %v2196_v35 = vld [vmem:[%s3741_s1] sm:$0xf]  ;;  %v2428_v36 = vld [vmem:[%s3741_s1 + $0xc] sm:$0xf0]  ;;  %v2426_v37 = vld [vmem:[%s3741_s1 + $0x4] sm:$0xf]  ;;  %v2225_v38 = vor.u32 %v2431_v31, %v2222_v32 }
   0xa   :  { %350 = vmatpush.bf16.msra.mxu3 %v2241_v25  ;;  %v2198_v39 = vld [vmem:[%s3741_s1 + $0x10] sm:$0xf0]  ;;  %v2204_v40 = vld [vmem:[%s3741_s1 + $0x8] sm:$0xf]  ;;  %v2429_v41 = vld [vmem:[%s3741_s1 + $0x14] sm:$0xf0]  ;;  %v2197_v44 = vor.u32 %v2428_v36, %v2196_v35 }
   0xb   :  { %v2427_v42 = vld [vmem:[%s3741_s1 + $0xc] sm:$0xf]  ;;  %v2206_v43 = vld [vmem:[%s3741_s1 + $0x18] sm:$0xf0]  ;;  %v2201_v45 = vor.u32 %v2426_v37, %v2198_v39  ;;  %v2205_v46 = vor.u32 %v2429_v41, %v2204_v40  ;;  %v2418_v48 = vld [vmem:[%s3742_s0] sm:$0xff] }
   0xc   :  { %204 = vmatpush.bf16.msra.mxu0 %v2213_v29  ;;  %v2209_v47 = vor.u32 %v2427_v42, %v2206_v43  ;;  %v2419_v49 = vld [vmem:[%s3742_s0 + $0x8] sm:$0xff]  ;;  %v2420_v50 = vld [vmem:[%s3742_s0 + $0x10] sm:$0xff]  ;;  %v2421_v51 = vld [vmem:[%s3742_s0 + $0x18] sm:$0xff] }
   0xd   :  { %253 = vmatpush.bf16.msra.mxu1 %v2217_v33  ;;  %302 = vmatpush.bf16.msra.mxu2 %v2221_v34  ;;  %v2422_v52 = vld [vmem:[%s3742_s0 + $0x20] sm:$0xff]  ;;  %v2423_v53 = vld [vmem:[%s3742_s0 + $0x28] sm:$0xff]  ;;  %v2424_v54 = vld [vmem:[%s3742_s0 + $0x30] sm:$0xff] }
   0xe   :  { %351 = vmatpush.bf16.msra.mxu3 %v2225_v38  ;;  %v2425_v55 = vld [vmem:[%s3742_s0 + $0x38] sm:$0xff]  ;;  %v2464_v22 = vld [vmem:[%s3743_s4 + $0xb0] sm:$0xff]  ;;  %v2463_v34 = vld [vmem:[%s3743_s4 + $0xa8] sm:$0xff] }
   0xf   :  { %v2465_v10 = vld [vmem:[%s3743_s4 + $0xb8] sm:$0xff]  ;;  %v2472_v23 = vld [vmem:[%s3743_s4 + $0xf0] sm:$0xff]  ;;  %v2471_v35 = vld [vmem:[%s3743_s4 + $0xe8] sm:$0xff] }
  0x10   :  { %205 = vmatpush.bf16.msra.mxu0 %v2197_v44  ;;  %v2473_v11 = vld [vmem:[%s3743_s4 + $0xf8] sm:$0xff]  ;;  %v2448_v24 = vld [vmem:[%s3743_s4 + $0x30] sm:$0xff]  ;;  %v2447_v36 = vld [vmem:[%s3743_s4 + $0x28] sm:$0xff] }
  0x11   :  { %254 = vmatpush.bf16.msra.mxu1 %v2201_v45  ;;  %303 = vmatpush.bf16.msra.mxu2 %v2205_v46  ;;  %v2449_v12 = vld [vmem:[%s3743_s4 + $0x38] sm:$0xff]  ;;  %v2456_v25 = vld [vmem:[%s3743_s4 + $0x70] sm:$0xff]  ;;  %v2455_v37 = vld [vmem:[%s3743_s4 + $0x68] sm:$0xff] }
  0x12   :  { %352 = vmatpush.bf16.msra.mxu3 %v2209_v47  ;;  %v2457_v13 = vld [vmem:[%s3743_s4 + $0x78] sm:$0xff] }
  0x13   :  { %2258 = vmatmul.msk.bf16.vlgmr.msra.gmra.mxu0 %vm173_vm0, %v2418_v48 }
  0x14   :  { %2266 = vmatmul.msk.bf16.vlgmr.msra.gmra.mxu1 %vm173_vm0, %v2418_v48  ;;  %2274 = vmatmul.msk.bf16.vlgmr.msra.gmra.mxu2 %vm173_vm0, %v2418_v48 }
  0x15   :  { %2282 = vmatmul.msk.bf16.vlgmr.msra.gmra.mxu3 %vm173_vm0, %v2418_v48  ;;  %1443 = vmatpush.bf16.msrb.mxu2 %v2465_v10 }
  0x16   :  { %1492 = vmatpush.bf16.msrb.mxu3 %v2473_v11  ;;  %1345 = vmatpush.bf16.msrb.mxu0 %v2449_v12 }
  0x17   :  { %1394 = vmatpush.bf16.msrb.mxu1 %v2457_v13 }
  0x19   :  { %1444 = vmatpush.bf16.msrb.mxu2 %v2464_v22 }
  0x1a   :  { %1493 = vmatpush.bf16.msrb.mxu3 %v2472_v23  ;;  %1346 = vmatpush.bf16.msrb.mxu0 %v2448_v24  ;;  %v2462_v24 = vld [vmem:[%s3743_s4 + $0xa0] sm:$0xff] }
  0x1b   :  { %1395 = vmatpush.bf16.msrb.mxu1 %v2456_v25  ;;  %v2470_v25 = vld [vmem:[%s3743_s4 + $0xe0] sm:$0xff] }
  0x1d   :  { %1445 = vmatpush.bf16.msrb.mxu2 %v2463_v34  ;;  %v2446_v34 = vld [vmem:[%s3743_s4 + $0x20] sm:$0xff] }
  0x1e   :  { %1494 = vmatpush.bf16.msrb.mxu3 %v2471_v35  ;;  %1347 = vmatpush.bf16.msrb.mxu0 %v2447_v36 }
  0x1f   :  { %1396 = vmatpush.bf16.msrb.mxu1 %v2455_v37 }
  0x21   :  { %1446 = vmatpush.bf16.msrb.mxu2 %v2462_v24 }
  0x22   :  { %1495 = vmatpush.bf16.msrb.mxu3 %v2470_v25  ;;  %1348 = vmatpush.bf16.msrb.mxu0 %v2446_v34 }
  0x23   :  { %2259 = vmatmul.msk.bf16.gmra.mxu0 %vm173_vm0, %v2419_v49 }
  0x24   :  { %2267 = vmatmul.msk.bf16.gmra.mxu1 %vm173_vm0, %v2419_v49  ;;  %2275 = vmatmul.msk.bf16.gmra.mxu2 %vm173_vm0, %v2419_v49 }
  0x25   :  { %2283 = vmatmul.msk.bf16.gmra.mxu3 %vm173_vm0, %v2419_v49 }
  0x33   :  { %2260 = vmatmul.msk.bf16.gmra.mxu0 %vm173_vm0, %v2420_v50 }
  0x34   :  { %2268 = vmatmul.msk.bf16.gmra.mxu1 %vm173_vm0, %v2420_v50  ;;  %2276 = vmatmul.msk.bf16.gmra.mxu2 %vm173_vm0, %v2420_v50 }
  0x35   :  { %2284 = vmatmul.msk.bf16.gmra.mxu3 %vm173_vm0, %v2420_v50 }
  0x43   :  { %2261 = vmatmul.msk.bf16.gmra.mxu0 %vm173_vm0, %v2421_v51 }
  0x44   :  { %2269 = vmatmul.msk.bf16.gmra.mxu1 %vm173_vm0, %v2421_v51  ;;  %2277 = vmatmul.msk.bf16.gmra.mxu2 %vm173_vm0, %v2421_v51 }
  0x45   :  { %2285 = vmatmul.msk.bf16.gmra.mxu3 %vm173_vm0, %v2421_v51 }
  0x53   :  { %2262 = vmatmul.msk.bf16.gmra.mxu0 %vm173_vm0, %v2422_v52 }
  0x54   :  { %2270 = vmatmul.msk.bf16.gmra.mxu1 %vm173_vm0, %v2422_v52  ;;  %2278 = vmatmul.msk.bf16.gmra.mxu2 %vm173_vm0, %v2422_v52 }
  0x55   :  { %2286 = vmatmul.msk.bf16.gmra.mxu3 %vm173_vm0, %v2422_v52 }
  0x63   :  { %2263 = vmatmul.msk.bf16.gmra.mxu0 %vm173_vm0, %v2423_v53 }
  0x64   :  { %2271 = vmatmul.msk.bf16.gmra.mxu1 %vm173_vm0, %v2423_v53  ;;  %2279 = vmatmul.msk.bf16.gmra.mxu2 %vm173_vm0, %v2423_v53 }
  0x65   :  { %2287 = vmatmul.msk.bf16.gmra.mxu3 %vm173_vm0, %v2423_v53 }
  0x73   :  { %2264 = vmatmul.msk.bf16.gmra.mxu0 %vm173_vm0, %v2424_v54 }
  0x74   :  { %2272 = vmatmul.msk.bf16.gmra.mxu1 %vm173_vm0, %v2424_v54  ;;  %2280 = vmatmul.msk.bf16.gmra.mxu2 %vm173_vm0, %v2424_v54 }
  0x75   :  { %2288 = vmatmul.msk.bf16.gmra.mxu3 %vm173_vm0, %v2424_v54 }
  0x83   :  { %2265 = vmatmul.msk.bf16.gmra.mxu0 %vm173_vm0, %v2425_v55 }
  0x84   :  { %2273 = vmatmul.msk.bf16.gmra.mxu1 %vm173_vm0, %v2425_v55  ;;  %2281 = vmatmul.msk.bf16.gmra.mxu2 %vm173_vm0, %v2425_v55 }
  0x85   :  { %2289 = vmatmul.msk.bf16.gmra.mxu3 %vm173_vm0, %v2425_v55 }
  0x90   :  { %v2664_v56 = vpop.f32.mrf.mxu0 }
  0x91   :  { %v2666_v57 = vpop.f32.mrf.mxu1  ;;  %v484_v43 = vmul.f32 %v2664_v56, %v2664_v56 }
  0x92   :  { %v485_v50 = vmul.f32 %v2666_v57, %v2666_v57 }
  0x97   :  { %v2668_v58 = vpop.f32.mrf.mxu2 }
  0x98   :  { %3784 = vst [vmem:[#allocation3_spill] sm:$0xff] %v2668_v58  ;;  %v2670_v59 = vpop.f32.mrf.mxu3  ;;  %v2672_v60 = vpop.f32.mrf.mxu0  ;;  %v486_v51 = vmul.f32 %v2668_v58, %v2668_v58 }
  0x99   :  { %3785 = vst [vmem:[#allocation4_spill] sm:$0xff] %v2670_v59  ;;  %v2674_v61 = vpop.f32.mrf.mxu1  ;;  %v488_v44 = vmul.f32 %v2672_v60, %v2672_v60  ;;  %v487_v52 = vmul.f32 %v2670_v59, %v2670_v59  ;;  %v396_v53 = vadd.f32 %v2672_v60, %v2664_v56 }
  0x9a   :  { %v489_v45 = vmul.f32 %v2674_v61, %v2674_v61  ;;  %v417_v10 = vadd.f32 %v2674_v61, %v2666_v57 }
  0x9b   :  { %v548_v13 = vadd.f32 %v488_v44, %v484_v43  ;;  %v2454_v44 = vld [vmem:[%s3743_s4 + $0x60] sm:$0xff] }
  0x9c   :  { %v569_v22 = vadd.f32 %v489_v45, %v485_v50  ;;  %1397 = vmatpush.bf16.msrb.mxu1 %v2454_v44 }
  0x9f   :  { %v2676_v62 = vpop.f32.mrf.mxu2 }
  0xa0   :  { %3786 = vst [vmem:[#allocation5_spill] sm:$0xff] %v2676_v62  ;;  %v2678_v63 = vpop.f32.mrf.mxu3  ;;  %v2680_v0 = vpop.f32.mrf.mxu0  ;;  %v490_v48 = vmul.f32 %v2676_v62, %v2676_v62  ;;  %v438_v23 = vadd.f32 %v2676_v62, %v2668_v58 }
  0xa1   :  { %3787 = vst [vmem:[#allocation6_spill] sm:$0xff] %v2678_v63  ;;  %v2682_v1 = vpop.f32.mrf.mxu1  ;;  %v491_v54 = vmul.f32 %v2678_v63, %v2678_v63  ;;  %v492_v55 = vmul.f32 %v2680_v0, %v2680_v0  ;;  %v397_v12 = vadd.f32 %v396_v53, %v2680_v0  ;;  %v459_v43 = vadd.f32 %v2678_v63, %v2670_v59 }
  0xa2   :  { %3788 = vst [vmem:[#allocation7_spill] sm:$0xff] %v2680_v0  ;;  %v493_v11 = vmul.f32 %v2682_v1, %v2682_v1  ;;  %v418_v35 = vadd.f32 %v417_v10, %v2682_v1  ;;  %v590_v37 = vadd.f32 %v490_v48, %v486_v51 }
  0xa3   :  { %3789 = vst [vmem:[#allocation8_spill] sm:$0xff] %v2682_v1  ;;  %v549_v10 = vadd.f32 %v548_v13, %v492_v55  ;;  %v611_v51 = vadd.f32 %v491_v54, %v487_v52 }
  0xa4   :  { %v570_v48 = vadd.f32 %v569_v22, %v493_v11 }
  0xa7   :  { %v2684_v2 = vpop.f32.mrf.mxu2 }
  0xa8   :  { %3790 = vst [vmem:[#allocation9_spill] sm:$0xff] %v2684_v2  ;;  %v2686_v3 = vpop.f32.mrf.mxu3  ;;  %v2688_v4 = vpop.f32.mrf.mxu0  ;;  %v494_v36 = vmul.f32 %v2684_v2, %v2684_v2  ;;  %v439_v0 = vadd.f32 %v438_v23, %v2684_v2 }
  0xa9   :  { %3791 = vst [vmem:[#allocation10_spill] sm:$0xff] %v2686_v3  ;;  %v2690_v5 = vpop.f32.mrf.mxu1  ;;  %v495_v45 = vmul.f32 %v2686_v3, %v2686_v3  ;;  %v496_v50 = vmul.f32 %v2688_v4, %v2688_v4  ;;  %v460_v63 = vadd.f32 %v459_v43, %v2686_v3  ;;  %v398_v62 = vadd.f32 %v397_v12, %v2688_v4 }
  0xaa   :  { %v497_v53 = vmul.f32 %v2690_v5, %v2690_v5  ;;  %v591_v55 = vadd.f32 %v590_v37, %v494_v36  ;;  %v419_v12 = vadd.f32 %v418_v35, %v2690_v5 }
  0xab   :  { %v612_v22 = vadd.f32 %v611_v51, %v495_v45  ;;  %v550_v23 = vadd.f32 %v549_v10, %v496_v50 }
  0xac   :  { %v571_v25 = vadd.f32 %v570_v48, %v497_v53 }
  0xaf   :  { %v2692_v6 = vpop.f32.mrf.mxu2 }
  0xb0   :  { %v2694_v7 = vpop.f32.mrf.mxu3  ;;  %v2696_v8 = vpop.f32.mrf.mxu0  ;;  %v498_v59 = vmul.f32 %v2692_v6, %v2692_v6  ;;  %v440_v36 = vadd.f32 %v439_v0, %v2692_v6 }
  0xb1   :  { %v2698_v9 = vpop.f32.mrf.mxu1  ;;  %v499_v52 = vmul.f32 %v2694_v7, %v2694_v7  ;;  %v500_v54 = vmul.f32 %v2696_v8, %v2696_v8  ;;  %v399_v34 = vadd.f32 %v398_v62, %v2696_v8  ;;  %v461_v43 = vadd.f32 %v460_v63, %v2694_v7 }
  0xb2   :  { %v501_v11 = vmul.f32 %v2698_v9, %v2698_v9  ;;  %v420_v44 = vadd.f32 %v419_v12, %v2698_v9  ;;  %v592_v3 = vadd.f32 %v591_v55, %v498_v59 }
  0xb3   :  { %v551_v35 = vadd.f32 %v550_v23, %v500_v54  ;;  %v613_v53 = vadd.f32 %v612_v22, %v499_v52 }
  0xb4   :  { %v572_v50 = vadd.f32 %v571_v25, %v501_v11 }
  0xb7   :  { %v2712_v14 = vpop.f32.mrf.mxu2 }
  0xb8   :  { %v2714_v15 = vpop.f32.mrf.mxu3  ;;  %v2716_v16 = vpop.f32.mrf.mxu0  ;;  %v502_v37 = vmul.f32 %v2712_v14, %v2712_v14  ;;  %v441_v0 = vadd.f32 %v440_v36, %v2712_v14 }
  0xb9   :  { %3792 = vst [vmem:[#allocation11_spill] sm:$0xff] %v2714_v15  ;;  %v2718_v17 = vpop.f32.mrf.mxu1  ;;  %v503_v2 = vmul.f32 %v2714_v15, %v2714_v15  ;;  %v504_v45 = vmul.f32 %v2716_v16, %v2716_v16  ;;  %v462_v10 = vadd.f32 %v461_v43, %v2714_v15  ;;  %v400_v59 = vadd.f32 %v399_v34, %v2716_v16 }
  0xba   :  { %v505_v62 = vmul.f32 %v2718_v17, %v2718_v17  ;;  %v593_v48 = vadd.f32 %v592_v3, %v502_v37  ;;  %v421_v23 = vadd.f32 %v420_v44, %v2718_v17 }
  0xbb   :  { %v614_v11 = vadd.f32 %v613_v53, %v503_v2  ;;  %v552_v22 = vadd.f32 %v551_v35, %v504_v45 }
  0xbc   :  { %v573_v36 = vadd.f32 %v572_v50, %v505_v62 }
  0xbf   :  { %v2720_v18 = vpop.f32.mrf.mxu2 }
  0xc0   :  { %v2722_v19 = vpop.f32.mrf.mxu3  ;;  %v2724_v20 = vpop.f32.mrf.mxu0  ;;  %v506_v63 = vmul.f32 %v2720_v18, %v2720_v18  ;;  %v442_v37 = vadd.f32 %v441_v0, %v2720_v18 }
  0xc1   :  { %3793 = vst [vmem:[#allocation12_spill] sm:$0xff] %v2722_v19  ;;  %v2726_v21 = vpop.f32.mrf.mxu1  ;;  %v507_v51 = vmul.f32 %v2722_v19, %v2722_v19  ;;  %v508_v55 = vmul.f32 %v2724_v20, %v2724_v20  ;;  %v401_v34 = vadd.f32 %v400_v59, %v2724_v20  ;;  %v463_v43 = vadd.f32 %v462_v10, %v2722_v19 }
  0xc2   :  { %3794 = vst [vmem:[#allocation13_spill] sm:$0xff] %v2724_v20  ;;  %v509_v52 = vmul.f32 %v2726_v21, %v2726_v21  ;;  %v594_v2 = vadd.f32 %v593_v48, %v506_v63  ;;  %v422_v59 = vadd.f32 %v421_v23, %v2726_v21 }
  0xc3   :  { %v553_v53 = vadd.f32 %v552_v22, %v508_v55  ;;  %v615_v62 = vadd.f32 %v614_v11, %v507_v51 }
  0xc4   :  { %v574_v50 = vadd.f32 %v573_v36, %v509_v52 }
  0xc7   :  { %v2740_v26 = vpop.f32.mrf.mxu2 }
  0xc8   :  { %v2742_v27 = vpop.f32.mrf.mxu3  ;;  %v2744_v28 = vpop.f32.mrf.mxu0  ;;  %v510_v12 = vmul.f32 %v2740_v26, %v2740_v26  ;;  %v443_v0 = vadd.f32 %v442_v37, %v2740_v26 }
  0xc9   :  { %3795 = vst [vmem:[#allocation14_spill] sm:$0xff] %v2742_v27  ;;  %v2746_v29 = vpop.f32.mrf.mxu1  ;;  %v511_v44 = vmul.f32 %v2742_v27, %v2742_v27  ;;  %v512_v45 = vmul.f32 %v2744_v28, %v2744_v28  ;;  %v464_v20 = vadd.f32 %v463_v43, %v2742_v27  ;;  %v402_v63 = vadd.f32 %v401_v34, %v2744_v28 }
  0xca   :  { %v513_v35 = vmul.f32 %v2746_v29, %v2746_v29  ;;  %v595_v10 = vadd.f32 %v594_v2, %v510_v12  ;;  %v423_v22 = vadd.f32 %v422_v59, %v2746_v29 }
  0xcb   :  { %v616_v51 = vadd.f32 %v615_v62, %v511_v44  ;;  %v554_v11 = vadd.f32 %v553_v53, %v512_v45 }
  0xcc   :  { %v575_v23 = vadd.f32 %v574_v50, %v513_v35 }
  0xcf   :  { %v2748_v30 = vpop.f32.mrf.mxu2 }
  0xd0   :  { %3796 = vst [vmem:[#allocation15_spill] sm:$0xff] %v2748_v30  ;;  %v2750_v31 = vpop.f32.mrf.mxu3  ;;  %v2752_v32 = vpop.f32.mrf.mxu0  ;;  %v514_v48 = vmul.f32 %v2748_v30, %v2748_v30  ;;  %v444_v34 = vadd.f32 %v443_v0, %v2748_v30 }
  0xd1   :  { %3797 = vst [vmem:[#allocation16_spill] sm:$0xff] %v2750_v31  ;;  %v2754_v33 = vpop.f32.mrf.mxu1  ;;  %v515_v19 = vmul.f32 %v2750_v31, %v2750_v31  ;;  %v516_v55 = vmul.f32 %v2752_v32, %v2752_v32  ;;  %v403_v12 = vadd.f32 %v402_v63, %v2752_v32  ;;  %v465_v37 = vadd.f32 %v464_v20, %v2750_v31 }
  0xd2   :  { %3798 = vst [vmem:[#allocation17_spill] sm:$0xff] %v2752_v32  ;;  %v517_v52 = vmul.f32 %v2754_v33, %v2754_v33  ;;  %v424_v2 = vadd.f32 %v423_v22, %v2754_v33  ;;  %v596_v20 = vadd.f32 %v595_v10, %v514_v48 }
  0xd3   :  { %3799 = vst [vmem:[#allocation18_spill] sm:$0xff] %v2754_v33  ;;  %v555_v50 = vadd.f32 %v554_v11, %v516_v55  ;;  %v617_v0 = vadd.f32 %v616_v51, %v515_v19 }
  0xd4   :  { %v576_v62 = vadd.f32 %v575_v23, %v517_v52 }
  0xd7   :  { %v2768_v38 = vpop.f32.mrf.mxu2 }
  0xd8   :  { %v2770_v39 = vpop.f32.mrf.mxu3  ;;  %v2772_v40 = vpop.f32.mrf.mxu0  ;;  %v518_v36 = vmul.f32 %v2768_v38, %v2768_v38  ;;  %v445_v22 = vadd.f32 %v444_v34, %v2768_v38 }
  0xd9   :  { %v2774_v41 = vpop.f32.mrf.mxu1  ;;  %v519_v44 = vmul.f32 %v2770_v39, %v2770_v39  ;;  %v520_v45 = vmul.f32 %v2772_v40, %v2772_v40  ;;  %v466_v33 = vadd.f32 %v465_v37, %v2770_v39  ;;  %v404_v32 = vadd.f32 %v403_v12, %v2772_v40 }
  0xda   :  { %v521_v35 = vmul.f32 %v2774_v41, %v2774_v41  ;;  %v597_v27 = vadd.f32 %v596_v20, %v518_v36  ;;  %v425_v52 = vadd.f32 %v424_v2, %v2774_v41 }
  0xdb   :  { %v618_v10 = vadd.f32 %v617_v0, %v519_v44  ;;  %v556_v48 = vadd.f32 %v555_v50, %v520_v45 }
  0xdc   :  { %v577_v51 = vadd.f32 %v576_v62, %v521_v35 }
  0xdf   :  { %v2776_v42 = vpop.f32.mrf.mxu2 }
  0xe0   :  { %v2784_v46 = vpop.f32.mrf.mxu3  ;;  %v2786_v47 = vpop.f32.mrf.mxu0  ;;  %v522_v31 = vmul.f32 %v2776_v42, %v2776_v42  ;;  %v446_v11 = vadd.f32 %v445_v22, %v2776_v42 }
  0xe1   :  { %v2790_v49 = vpop.f32.mrf.mxu1  ;;  %v523_v30 = vmul.f32 %v2784_v46, %v2784_v46  ;;  %v524_v55 = vmul.f32 %v2786_v47, %v2786_v47  ;;  %v467_v23 = vadd.f32 %v466_v33, %v2784_v46  ;;  %v405_v12 = vadd.f32 %v404_v32, %v2786_v47 }
  0xe2   :  { %v525_v19 = vmul.f32 %v2790_v49, %v2790_v49  ;;  %v598_v36 = vadd.f32 %v597_v27, %v522_v31  ;;  %v426_v50 = vadd.f32 %v425_v52, %v2790_v49 }
  0xe3   :  { %v619_v45 = vadd.f32 %v618_v10, %v523_v30  ;;  %v557_v35 = vadd.f32 %v556_v48, %v524_v55 }
  0xe4   :  { %v578_v33 = vadd.f32 %v577_v51, %v525_v19 }
  0xe7   :  { %v2834_v1 = vpop.f32.mrf.mxu2 }
  0xe8   :  { %3800 = vst [vmem:[#allocation19_spill] sm:$0xff] %v2834_v1  ;;  %v2841_v58 = vpop.f32.mrf.mxu3  ;;  %v2843_v24 = vpop.f32.mrf.mxu0  ;;  %v526_v34 = vmul.f32 %v2834_v1, %v2834_v1  ;;  %v447_v32 = vadd.f32 %v446_v11, %v2834_v1 }
  0xe9   :  { %3801 = vst [vmem:[#allocation20_spill] sm:$0xff] %v2841_v58  ;;  %v2851_v13 = vpop.f32.mrf.mxu1  ;;  %v527_v37 = vmul.f32 %v2841_v58, %v2841_v58  ;;  %v528_v44 = vmul.f32 %v2843_v24, %v2843_v24  ;;  %v468_v27 = vadd.f32 %v467_v23, %v2841_v58  ;;  %v406_v31 = vadd.f32 %v405_v12, %v2843_v24 }
  0xea   :  { %v529_v2 = vmul.f32 %v2851_v13, %v2851_v13  ;;  %v599_v30 = vadd.f32 %v598_v36, %v526_v34  ;;  %v427_v55 = vadd.f32 %v426_v50, %v2851_v13 }
  0xeb   :  { %v620_v52 = vadd.f32 %v619_v45, %v527_v37  ;;  %v558_v51 = vadd.f32 %v557_v35, %v528_v44 }
  0xec   :  { %v579_v11 = vadd.f32 %v578_v33, %v529_v2 }
  0xef   :  { %v2877_v54 = vpop.f32.mrf.mxu2 }
  0xf0   :  { %v2882_v25 = vpop.f32.mrf.mxu3  ;;  %v2884_v3 = vpop.f32.mrf.mxu0  ;;  %v530_v20 = vmul.f32 %v2877_v54, %v2877_v54  ;;  %v448_v12 = vadd.f32 %v447_v32, %v2877_v54 }
  0xf1   :  { %3802 = vst [vmem:[#allocation21_spill] sm:$0xff] %v2882_v25  ;;  %v2889_v15 = vpop.f32.mrf.mxu1  ;;  %v531_v19 = vmul.f32 %v2882_v25, %v2882_v25  ;;  %v532_v10 = vmul.f32 %v2884_v3, %v2884_v3  ;;  %v469_v34 = vadd.f32 %v468_v27, %v2882_v25  ;;  %v407_v36 = vadd.f32 %v406_v31, %v2884_v3 }
  0xf2   :  { %3803 = vst [vmem:[#allocation22_spill] sm:$0xff] %v2884_v3  ;;  %v533_v23 = vmul.f32 %v2889_v15, %v2889_v15  ;;  %v600_v58 = vadd.f32 %v599_v30, %v530_v20  ;;  %v428_v1 = vadd.f32 %v427_v55, %v2889_v15 }
  0xf3   :  { %3804 = vst [vmem:[#allocation23_spill] sm:$0xff] %v2889_v15  ;;  %v621_v2 = vadd.f32 %v620_v52, %v531_v19  ;;  %v559_v45 = vadd.f32 %v558_v51, %v532_v10 }
  0xf4   :  { %v580_v32 = vadd.f32 %v579_v11, %v533_v23 }
  0xf7   :  { %v2915_v43 = vpop.f32.mrf.mxu2 }
  0xf8   :  { %3805 = vst [vmem:[#allocation24_spill] sm:$0xff] %v2915_v43  ;;  %v2924_v53 = vpop.f32.mrf.mxu3  ;;  %v2926_v59 = vpop.f32.mrf.mxu0  ;;  %v534_v37 = vmul.f32 %v2915_v43, %v2915_v43  ;;  %v449_v30 = vadd.f32 %v448_v12, %v2915_v43 }
  0xf9   :  { %3806 = vst [vmem:[#allocation25_spill] sm:$0xff] %v2924_v53  ;;  %v2928_v63 = vpop.f32.mrf.mxu1  ;;  %v536_v50 = vmul.f32 %v2926_v59, %v2926_v59  ;;  %v408_v35 = vadd.f32 %v407_v36, %v2926_v59  ;;  %v535_v27 = vmul.f32 %v2924_v53, %v2924_v53  ;;  %v470_v55 = vadd.f32 %v469_v34, %v2924_v53 }
  0xfa   :  { %3807 = vst [vmem:[#allocation26_spill] sm:$0xff] %v2926_v59  ;;  %v537_v44 = vmul.f32 %v2928_v63, %v2928_v63  ;;  %v429_v31 = vadd.f32 %v428_v1, %v2928_v63  ;;  %v601_v51 = vadd.f32 %v600_v58, %v534_v37 }
  0xfb   :  { %3808 = vst [vmem:[#allocation27_spill] sm:$0xff] %v2928_v63  ;;  %v560_v19 = vadd.f32 %v559_v45, %v536_v50  ;;  %v622_v37 = vadd.f32 %v621_v2, %v535_v27 }
  0xfc   :  { %v581_v36 = vadd.f32 %v580_v32, %v537_v44 }
  0xff   :  { %v2954_v62 = vpop.f32.mrf.mxu2 }
 0x100   :  { %v2961_v0 = vpop.f32.mrf.mxu3  ;;  %v2963_v22 = vpop.f32.mrf.mxu0  ;;  %v538_v11 = vmul.f32 %v2954_v62, %v2954_v62 }
 0x101   :  { %3809 = vst [vmem:[#allocation28_spill] sm:$0xff] %v2963_v22  ;;  %v2970_v48 = vpop.f32.mrf.mxu1  ;;  %v540_v33 = vmul.f32 %v2963_v22, %v2963_v22  ;;  %v409_v10 = vadd.f32 %v408_v35, %v2963_v22  ;;  %v539_v12 = vmul.f32 %v2961_v0, %v2961_v0 }
 0x102   :  { %3810 = vst [vmem:[#allocation29_spill] sm:$0xff] %v2970_v48  ;;  %v541_v20 = vmul.f32 %v2970_v48, %v2970_v48  ;;  %v430_v23 = vadd.f32 %v429_v31, %v2970_v48  ;;  %v450_v48 = vadd.f32 %v449_v30, %v2954_v62  ;;  %v602_v27 = vadd.f32 %v601_v51, %v538_v11 }
 0x103   :  { %v561_v34 = vadd.f32 %v560_v19, %v540_v33 }
 0x104   :  { %v582_v44 = vadd.f32 %v581_v36, %v541_v20  ;;  %v623_v20 = vadd.f32 %v622_v37, %v539_v12 }
 0x107   :  { %v2995_v52 = vpop.f32.mrf.mxu2 }
 0x108   :  { %v3000_v1 = vpop.f32.mrf.mxu3  ;;  %v3002_v63 = vpop.f32.mrf.mxu0  ;;  %v542_v31 = vmul.f32 %v2995_v52, %v2995_v52 }
 0x109   :  { %3811 = vst [vmem:[#allocation30_spill] sm:$0xff] %v3000_v1  ;;  %v410_v50 = vadd.f32 %v409_v10, %v3002_v63  ;;  %v544_v45 = vmul.f32 %v3002_v63, %v3002_v63  ;;  %v3009_v58 = vpop.f32.mrf.mxu1  ;;  %v543_v33 = vmul.f32 %v3000_v1, %v3000_v1 }
 0x10a   :  { %3812 = vst [vmem:[#allocation31_spill] sm:$0xff] %v3002_v63  ;;  %v431_v35 = vadd.f32 %v430_v23, %v3009_v58  ;;  %v545_v32 = vmul.f32 %v3009_v58, %v3009_v58  ;;  %v471_v63 = vadd.f32 %v470_v55, %v2961_v0  ;;  %v603_v59 = vadd.f32 %v602_v27, %v542_v31 }
 0x10b   :  { %3813 = vst [vmem:[#allocation32_spill] sm:$0xff] %v3009_v58  ;;  %v411_v19 = vrot.slane %v410_v50, 4  ;;  %v562_v10 = vadd.f32 %v561_v34, %v544_v45  ;;  %v451_v58 = vadd.f32 %v450_v48, %v2995_v52  ;;  %v624_v3 = vadd.f32 %v623_v20, %v543_v33 }
 0x10c   :  { %v432_v22 = vrot.slane %v431_v35, 4  ;;  %v583_v2 = vadd.f32 %v582_v44, %v545_v32  ;;  %v472_v53 = vadd.f32 %v471_v63, %v3000_v1 }
 0x10d   :  { %v412_v36 = vadd.f32 %v411_v19, %v410_v50  ;;  %v563_v23 = vrot.slane %v562_v10, 4 }
 0x10e   :  { %v433_v43 = vadd.f32 %v432_v22, %v431_v35  ;;  %v584_v15 = vrot.slane %v583_v2, 4 }
 0x10f   :  { %v413_v25 = vrot.slane %v412_v36, 2  ;;  %v564_v34 = vadd.f32 %v563_v23, %v562_v10  ;;  %v3022_v45 = vpop.f32.mrf.mxu2 }
 0x110   :  { %3814 = vst [vmem:[#allocation33_spill] sm:$0xff] %v3022_v45  ;;  %v434_v30 = vrot.slane %v433_v43, 2  ;;  %v585_v55 = vadd.f32 %v584_v15, %v583_v2  ;;  %v452_v44 = vadd.f32 %v451_v58, %v3022_v45  ;;  %v546_v51 = vmul.f32 %v3022_v45, %v3022_v45  ;;  %v3027_v11 = vpop.f32.mrf.mxu3 }
 0x111   :  { %3815 = vst [vmem:[#allocation34_spill] sm:$0xff] %v3027_v11  ;;  %v414_v48 = vadd.f32 %v413_v25, %v412_v36  ;;  %v565_v12 = vrot.slane %v564_v34, 2  ;;  %v473_v63 = vadd.f32 %v472_v53, %v3027_v11  ;;  %v547_v22 = vmul.f32 %v3027_v11, %v3027_v11 }
 0x112   :  { %v435_v50 = vadd.f32 %v434_v30, %v433_v43  ;;  %v586_v37 = vrot.slane %v585_v55, 2  ;;  %v453_v35 = vrot.slane %v452_v44, 4  ;;  %v604_v32 = vadd.f32 %v603_v59, %v546_v51 }
 0x113   :  { %v415_v31 = vrot.slane %v414_v48, 1  ;;  %v566_v15 = vadd.f32 %v565_v12, %v564_v34  ;;  %v474_v33 = vrot.slane %v473_v63, 4  ;;  %v625_v58 = vadd.f32 %v624_v3, %v547_v22 }
 0x114   :  { %v436_v19 = vrot.slane %v435_v50, 1  ;;  %v587_v10 = vadd.f32 %v586_v37, %v585_v55  ;;  %v454_v2 = vadd.f32 %v453_v35, %v452_v44  ;;  %v605_v27 = vrot.slane %v604_v32, 4 }
 0x115   :  { %v416_v20 = vadd.f32 %v415_v31, %v414_v48  ;;  %v567_v25 = vrot.slane %v566_v15, 1  ;;  %v475_v36 = vadd.f32 %v474_v33, %v473_v63  ;;  %v626_v23 = vrot.slane %v625_v58, 4 }
 0x116   :  { %v437_v53 = vadd.f32 %v436_v19, %v435_v50  ;;  %v588_v1 = vrot.slane %v587_v10, 1  ;;  %v455_v45 = vrot.slane %v454_v2, 2  ;;  %v606_v11 = vadd.f32 %v605_v27, %v604_v32 }
 0x117   :  { %v3032_v43 = vmul.f32 0.0078125, %v416_v20  ;;  %v568_v30 = vadd.f32 %v567_v25, %v566_v15  ;;  %v476_v59 = vrot.slane %v475_v36, 2  ;;  %v627_v51 = vadd.f32 %v626_v23, %v625_v58 }
 0x118   :  { %v3034_v34 = vmul.f32 0.0078125, %v437_v53  ;;  %v589_v3 = vadd.f32 %v588_v1, %v587_v10  ;;  %v456_v12 = vadd.f32 %v455_v45, %v454_v2  ;;  %v607_v55 = vrot.slane %v606_v11, 2 }
 0x119   :  { %v632_v44 = vmul.f32 0.0078125, %v568_v30  ;;  %v636_v48 = vmul.f32 %v3032_v43, %v3032_v43  ;;  %v477_v63 = vadd.f32 %v476_v59, %v475_v36  ;;  %v628_v22 = vrot.slane %v627_v51, 2 }
 0x11a   :  { %v633_v50 = vmul.f32 0.0078125, %v589_v3  ;;  %v637_v37 = vmul.f32 %v3034_v34, %v3034_v34  ;;  %v457_v35 = vrot.slane %v456_v12, 1  ;;  %v608_v32 = vadd.f32 %v607_v55, %v606_v11  ;;  %v2461_v3 = vld [vmem:[%s3743_s4 + $0x98] sm:$0xff] }
 0x11b   :  { %v640_v31 = vsub.f32 %v632_v44, %v636_v48  ;;  %v478_v15 = vrot.slane %v477_v63, 1  ;;  %v629_v33 = vadd.f32 %v628_v22, %v627_v51  ;;  %v2445_v55 = vld [vmem:[%s3743_s4 + $0x18] sm:$0xff]  ;;  %1447 = vmatpush.bf16.msrb.mxu2 %v2461_v3 }
 0x11c   :  { %v641_v58 = vsub.f32 %v633_v50, %v637_v37  ;;  %v458_v19 = vadd.f32 %v457_v35, %v456_v12  ;;  %v609_v1 = vrot.slane %v608_v32, 1  ;;  %v2469_v12 = vld [vmem:[%s3743_s4 + $0xd8] sm:$0xff]  ;;  %1349 = vmatpush.bf16.msrb.mxu0 %v2445_v55  ;;  %v2442_v55 = vld [vmem:[%s3743_s4] sm:$0xff] }
 0x11d   :  { %v3040_v45 = vadd.f32 1e-05, %v640_v31  ;;  %v479_v10 = vadd.f32 %v478_v15, %v477_v63  ;;  %v630_v2 = vrot.slane %v629_v33, 1  ;;  %v2453_v48 = vld [vmem:[%s3743_s4 + $0x58] sm:$0xff]  ;;  %1496 = vmatpush.bf16.msrb.mxu3 %v2469_v12  ;;  %v2468_v31 = vld [vmem:[%s3743_s4 + $0xd0] sm:$0xff] }
 0x11e   :  { %v3042_v27 = vadd.f32 1e-05, %v641_v58  ;;  %v3044_v20 = vmul.f32 0.0078125, %v458_v19  ;;  %v610_v25 = vadd.f32 %v609_v1, %v608_v32  ;;  %1398 = vmatpush.bf16.msrb.mxu1 %v2453_v48  ;;  %v2460_v32 = vld [vmem:[%s3743_s4 + $0x90] sm:$0xff] }
 0x11f   :  { %2474 = vrsqrt.f32 %v3040_v45  ;;  %v3047_v36 = vmul.f32 0.0078125, %v479_v10  ;;  %v631_v11 = vadd.f32 %v630_v2, %v629_v33  ;;  %v2444_v15 = vld [vmem:[%s3743_s4 + $0x10] sm:$0xff]  ;;  %1448 = vmatpush.bf16.msrb.mxu2 %v2460_v32  ;;  %v2459_v10 = vld [vmem:[%s3743_s4 + $0x88] sm:$0xff]  ;;  %vm654_vm12 = vweird.f32 %v3040_v45 }
 0x120   :  { %2476 = vrsqrt.f32 %v3042_v27  ;;  %v634_v23 = vmul.f32 0.0078125, %v610_v25  ;;  %v638_v53 = vmul.f32 %v3044_v20, %v3044_v20  ;;  %v2452_v58 = vld [vmem:[%s3743_s4 + $0x50] sm:$0xff]  ;;  %1350 = vmatpush.bf16.msrb.mxu0 %v2444_v15  ;;  %v2467_v2 = vld [vmem:[%s3743_s4 + $0xc8] sm:$0xff]  ;;  %vm664_vm2 = vweird.f32 %v3042_v27 }
 0x121   :  { %v635_v30 = vmul.f32 0.0078125, %v631_v11  ;;  %v639_v59 = vmul.f32 %v3047_v36, %v3047_v36  ;;  %1497 = vmatpush.bf16.msrb.mxu3 %v2468_v31  ;;  %v2443_v25 = vld [vmem:[%s3743_s4 + $0x8] sm:$0xff] }
 0x122   :  { %v642_v51 = vsub.f32 %v634_v23, %v638_v53  ;;  %1399 = vmatpush.bf16.msrb.mxu1 %v2452_v58  ;;  %v2451_v23 = vld [vmem:[%s3743_s4 + $0x48] sm:$0xff] }
 0x123   :  { %v643_v44 = vsub.f32 %v635_v30, %v639_v59  ;;  %1449 = vmatpush.bf16.msrb.mxu2 %v2459_v10  ;;  %v2458_v30 = vld [vmem:[%s3743_s4 + $0x80] sm:$0xff] }
 0x124   :  { %v3066_v63 = vadd.f32 1e-05, %v642_v51  ;;  %v2466_v59 = vld [vmem:[%s3743_s4 + $0xc0] sm:$0xff]  ;;  %1351 = vmatpush.bf16.msrb.mxu0 %v2443_v25 }
 0x125   :  { %v3068_v22 = vpop.eup %2474  ;;  %v3070_v50 = vadd.f32 1e-05, %v643_v44  ;;  %1498 = vmatpush.bf16.msrb.mxu3 %v2467_v2  ;;  %v2450_v44 = vld [vmem:[%s3743_s4 + $0x40] sm:$0xff] }
 0x126   :  { %v2477_v37 = vpop.eup %2476  ;;  %v649_v35 = vmul.f32 %v3068_v22, %v3040_v45  ;;  %2478 = vrsqrt.f32 %v3066_v63  ;;  %1400 = vmatpush.bf16.msrb.mxu1 %v2451_v23  ;;  %vm674_vm6 = vweird.f32 %v3066_v63  ;;  %vm655_vm7 = vweird.f32 %v3068_v22 }
 0x127   :  { %v659_v33 = vmul.f32 %v2477_v37, %v3042_v27  ;;  %2480 = vrsqrt.f32 %v3070_v50  ;;  %vm665_vm1 = vweird.f32 %v2477_v37  ;;  %1450 = vmatpush.bf16.msrb.mxu2 %v2458_v30  ;;  %vm684_vm9 = vweird.f32 %v3070_v50  ;;  %vm656_vm14 = vmor %vm654_vm12, %vm655_vm7 }
 0x128   :  { %v650_v1 = vmul.f32 %v3068_v22, %v649_v35  ;;  %1352 = vmatpush.bf16.msrb.mxu0 %v2442_v55  ;;  %vm666_vm3 = vmor %vm664_vm2, %vm665_vm1 }
 0x129   :  { %v660_v19 = vmul.f32 %v2477_v37, %v659_v33  ;;  %1499 = vmatpush.bf16.msrb.mxu3 %v2466_v59 }
 0x12a   :  { %v651_v48 = vmul.f32 0.5, %v650_v1  ;;  %1401 = vmatpush.bf16.msrb.mxu1 %v2450_v44 }
 0x12b   :  { %v661_v11 = vmul.f32 0.5, %v660_v19 }
 0x12c   :  { %v2479_v53 = vpop.eup %2478  ;;  %v652_v58 = vsub.f32 1.5, %v651_v48 }
 0x12d   :  { %v2481_v51 = vpop.eup %2480  ;;  %v662_v3 = vsub.f32 1.5, %v661_v11  ;;  %v669_v12 = vmul.f32 %v2479_v53, %v3066_v63  ;;  %vm675_vm4 = vweird.f32 %v2479_v53 }
 0x12e   :  { %v679_v35 = vmul.f32 %v2481_v51, %v3070_v50  ;;  %vm685_vm5 = vweird.f32 %v2481_v51  ;;  %v653_v11 = vmul.f32 %v3068_v22, %v652_v58  ;;  %vm676_vm8 = vmor %vm674_vm6, %vm675_vm4 }
 0x12f   :  { %v670_v32 = vmul.f32 %v2479_v53, %v669_v12  ;;  %v663_v31 = vmul.f32 %v2477_v37, %v662_v3  ;;  %vm686_vm10 = vmor %vm684_vm9, %vm685_vm5  ;;  %v394_v12 = vld [vmem:[%s3744_s2] sm:$0xf] }
 0x130   :  { %v680_v15 = vmul.f32 %v2481_v51, %v679_v35  ;;  %v657_v63 = vsel %vm656_vm14, %v3068_v22, %v653_v11 }
 0x131   :  { %v671_v33 = vmul.f32 0.5, %v670_v32  ;;  %v667_v2 = vsel %vm666_vm3, %v2477_v37, %v663_v31 }
 0x132   :  { %v681_v19 = vmul.f32 0.5, %v680_v15  ;;  %v692_v30 = vrot.slane %v667_v2, 7 }
 0x133   :  { %v672_v10 = vsub.f32 1.5, %v671_v33 }
 0x134   :  { %v682_v1 = vsub.f32 1.5, %v681_v19  ;;  %v696_v50 = vsel %vm695_vm11, %v657_v63, %v692_v30  ;;  %v3818_v63 = vld [vmem:[#allocation4_spill] sm:$0xff] }
 0x135   :  { %v673_v25 = vmul.f32 %v2479_v53, %v672_v10  ;;  %v395_v10 = vld [vmem:[%s3745_s3] sm:$0xf] }
 0x136   :  { %v683_v23 = vmul.f32 %v2481_v51, %v682_v1 }
 0x137   :  { %v677_v27 = vsel %vm676_vm8, %v2479_v53, %v673_v25 }
 0x138   :  { %v693_v37 = vrot.slane %v677_v27, 6  ;;  %v687_v59 = vsel %vm686_vm10, %v2481_v51, %v683_v23 }
 0x139   :  { %v694_v3 = vrot.slane %v687_v59, 5  ;;  %v3816_v59 = vld [vmem:[#allocation3_spill] sm:$0xff] }
 0x13b   :  { %v698_v53 = vsel %vm3779_vm13, %v693_v37, %v694_v3  ;;  %v3817_v3 = vld [vmem:[#allocation5_spill] sm:$0xff] }
 0x13c   :  { %v700_v55 = vsel %vm699_vm15, %v696_v50, %v698_v53 }
 0x13d   :  { %v702_v44 = vmul.f32 %v700_v55, %v394_v12  ;;  %v3819_v55 = vld [vmem:[#allocation6_spill] sm:$0xff] }
 0x13f   :  { %v3129_v45 = vperm.slane %v702_v44, 0  ;;  %v3131_v51 = vperm.slane %v702_v44, 1  ;;  %v3133_v48 = vperm.slane %v702_v44, 2  ;;  %v3135_v35 = vperm.slane %v702_v44, 3 }
 0x141   :  { %v713_v22 = vmul.f32 %v3131_v51, %v3034_v34  ;;  %v714_v32 = vmul.f32 %v3133_v48, %v3044_v20  ;;  %v715_v31 = vmul.f32 %v3135_v35, %v3047_v36  ;;  %v712_v15 = vmul.f32 %v3129_v45, %v3032_v43 }
 0x142   :  { %v728_v36 = vmul.f32 %v3129_v45, %v2664_v56  ;;  %v732_v43 = vmul.f32 %v3129_v45, %v2672_v60  ;;  %v729_v25 = vmul.f32 %v3131_v51, %v2666_v57  ;;  %v733_v37 = vmul.f32 %v3131_v51, %v2674_v61 }
 0x143   :  { %v720_v33 = vrot.slane %v713_v22, 7  ;;  %v721_v58 = vrot.slane %v714_v32, 6  ;;  %v722_v19 = vrot.slane %v715_v31, 5  ;;  %v730_v56 = vmul.f32 %v3133_v48, %v3816_v59 }
 0x144   :  { %v734_v60 = vmul.f32 %v3133_v48, %v3817_v3  ;;  %v731_v57 = vmul.f32 %v3135_v35, %v3818_v63  ;;  %v735_v44 = vmul.f32 %v3135_v35, %v3819_v55  ;;  %v3820_v3 = vld [vmem:[#allocation7_spill] sm:$0xff]  ;;  %v3821_v55 = vld [vmem:[#allocation8_spill] sm:$0xff] }
 0x145   :  { %v723_v2 = vsel %vm695_vm11, %v712_v15, %v720_v33  ;;  %v724_v34 = vsel %vm3779_vm13, %v721_v58, %v722_v19 }
 0x146   :  { %v725_v1 = vsel %vm699_vm15, %v723_v2, %v724_v34 }
 0x147   :  { %v727_v20 = vsub.f32 %v395_v10, %v725_v1 }
 0x149   :  { %v3157_v11 = vperm.slane %v727_v20, 0  ;;  %v3159_v23 = vperm.slane %v727_v20, 1  ;;  %v3161_v30 = vperm.slane %v727_v20, 2  ;;  %v3163_v27 = vperm.slane %v727_v20, 3 }
 0x14b   :  { %v801_v12 = vadd.f32 %v3157_v11, %v728_v36  ;;  %v805_v50 = vadd.f32 %v3157_v11, %v732_v43  ;;  %v802_v53 = vadd.f32 %v3159_v23, %v729_v25  ;;  %v806_v61 = vadd.f32 %v3159_v23, %v733_v37 }
 0x14c   :  { %v803_v22 = vadd.f32 %v3161_v30, %v730_v56  ;;  %v807_v32 = vadd.f32 %v3161_v30, %v734_v60  ;;  %v804_v31 = vadd.f32 %v3163_v27, %v731_v57  ;;  %v808_v37 = vadd.f32 %v3163_v27, %v735_v44 }
 0x14d   :  { %vm865_vm0 = vcmp.ge.f32.partialorder %v801_v12, 0.0  ;;  %vm869_vm1 = vcmp.ge.f32.partialorder %v805_v50, 0.0  ;;  %v929_v15 = vmul.f32 0.01, %v801_v12  ;;  %v933_v33 = vmul.f32 0.01, %v805_v50 }
 0x14e   :  { %vm866_vm2 = vcmp.ge.f32.partialorder %v802_v53, 0.0  ;;  %vm870_vm3 = vcmp.ge.f32.partialorder %v806_v61, 0.0  ;;  %v930_v58 = vmul.f32 0.01, %v802_v53  ;;  %v934_v19 = vmul.f32 0.01, %v806_v61 }
 0x14f   :  { %v993_v10 = vsel %vm865_vm0, %v801_v12, %v929_v15  ;;  %v997_v2 = vsel %vm869_vm1, %v805_v50, %v933_v33  ;;  %vm867_vm4 = vcmp.ge.f32.partialorder %v803_v22, 0.0  ;;  %vm871_vm5 = vcmp.ge.f32.partialorder %v807_v32, 0.0 }
 0x150   :  { %v1057_v34 = vpack.c.bf16 %v997_v2, %v993_v10  ;;  %v994_v1 = vsel %vm866_vm2, %v802_v53, %v930_v58  ;;  %v998_v20 = vsel %vm870_vm3, %v806_v61, %v934_v19  ;;  %v931_v36 = vmul.f32 0.01, %v803_v22  ;;  %v3823_v2 = vld [vmem:[#allocation10_spill] sm:$0xff] }
 0x151   :  { %v1058_v43 = vpack.c.bf16 %v998_v20, %v994_v1  ;;  %v935_v25 = vmul.f32 0.01, %v807_v32  ;;  %vm868_vm6 = vcmp.ge.f32.partialorder %v804_v31, 0.0  ;;  %v932_v56 = vmul.f32 0.01, %v804_v31 }
 0x152   :  { %1353 = vmatmul.bf16.vlgmr.msrb.gmra.mxu0 %v1057_v34  ;;  %v995_v59 = vsel %vm867_vm4, %v803_v22, %v931_v36  ;;  %v736_v60 = vmul.f32 %v3129_v45, %v3820_v3  ;;  %vm872_vm7 = vcmp.ge.f32.partialorder %v808_v37, 0.0  ;;  %v936_v57 = vmul.f32 0.01, %v808_v37 }
 0x153   :  { %1402 = vmatmul.bf16.vlgmr.msrb.gmra.mxu1 %v1058_v43  ;;  %v999_v63 = vsel %vm871_vm5, %v807_v32, %v935_v25  ;;  %v740_v12 = vmul.f32 %v3129_v45, %v2688_v4  ;;  %v996_v53 = vsel %vm868_vm6, %v804_v31, %v932_v56  ;;  %v737_v61 = vmul.f32 %v3131_v51, %v3821_v55  ;;  %v3822_v4 = vld [vmem:[#allocation9_spill] sm:$0xff] }
 0x154   :  { %v1059_v50 = vpack.c.bf16 %v999_v63, %v995_v59  ;;  %v741_v44 = vmul.f32 %v3131_v51, %v2690_v5  ;;  %v1000_v22 = vsel %vm872_vm7, %v808_v37, %v936_v57  ;;  %v809_v15 = vadd.f32 %v3157_v11, %v736_v60 }
 0x155   :  { %v813_v33 = vadd.f32 %v3157_v11, %v740_v12  ;;  %v1060_v32 = vpack.c.bf16 %v1000_v22, %v996_v53  ;;  %v810_v58 = vadd.f32 %v3159_v23, %v737_v61  ;;  %v738_v31 = vmul.f32 %v3133_v48, %v3822_v4 }
 0x156   :  { %1451 = vmatmul.bf16.vlgmr.msrb.gmra.mxu2 %v1059_v50  ;;  %v814_v19 = vadd.f32 %v3159_v23, %v741_v44  ;;  %v742_v10 = vmul.f32 %v3133_v48, %v2692_v6  ;;  %v739_v5 = vmul.f32 %v3135_v35, %v3823_v2  ;;  %v743_v34 = vmul.f32 %v3135_v35, %v2694_v7 }
 0x157   :  { %1500 = vmatmul.bf16.vlgmr.msrb.gmra.mxu3 %v1060_v32  ;;  %v937_v1 = vmul.f32 0.01, %v809_v15  ;;  %v941_v20 = vmul.f32 0.01, %v813_v33  ;;  %v811_v36 = vadd.f32 %v3161_v30, %v738_v31  ;;  %vm873_vm8 = vcmp.ge.f32.partialorder %v809_v15, 0.0 }
 0x158   :  { %v815_v43 = vadd.f32 %v3161_v30, %v742_v10  ;;  %vm877_vm9 = vcmp.ge.f32.partialorder %v813_v33, 0.0  ;;  %v938_v25 = vmul.f32 0.01, %v810_v58  ;;  %v942_v37 = vmul.f32 0.01, %v814_v19 }
 0x159   :  { %vm874_vm10 = vcmp.ge.f32.partialorder %v810_v58, 0.0  ;;  %vm878_vm11 = vcmp.ge.f32.partialorder %v814_v19, 0.0  ;;  %v812_v6 = vadd.f32 %v3163_v27, %v739_v5  ;;  %v816_v59 = vadd.f32 %v3163_v27, %v743_v34 }
 0x15a   :  { %v1001_v56 = vsel %vm873_vm8, %v809_v15, %v937_v1  ;;  %v1005_v3 = vsel %vm877_vm9, %v813_v33, %v941_v20  ;;  %v939_v60 = vmul.f32 0.01, %v811_v36  ;;  %v943_v7 = vmul.f32 0.01, %v815_v43  ;;  %v3825_v1 = vld [vmem:[#allocation12_spill] sm:$0xff] }
 0x15b   :  { %v1002_v63 = vsel %vm874_vm10, %v810_v58, %v938_v25  ;;  %v1006_v57 = vsel %vm878_vm11, %v814_v19, %v942_v37  ;;  %vm875_vm12 = vcmp.ge.f32.partialorder %v811_v36, 0.0  ;;  %vm879_vm14 = vcmp.ge.f32.partialorder %v815_v43, 0.0 }
 0x15c   :  { %v940_v12 = vmul.f32 0.01, %v812_v6  ;;  %v944_v50 = vmul.f32 0.01, %v816_v59  ;;  %v1061_v53 = vpack.c.bf16 %v1005_v3, %v1001_v56  ;;  %vm876_vm15 = vcmp.ge.f32.partialorder %v812_v6, 0.0 }
 0x15d   :  { %vm880_vm0 = vcmp.ge.f32.partialorder %v816_v59, 0.0  ;;  %v1062_v55 = vpack.c.bf16 %v1006_v57, %v1002_v63  ;;  %v1003_v61 = vsel %vm875_vm12, %v811_v36, %v939_v60  ;;  %v1007_v44 = vsel %vm879_vm14, %v815_v43, %v943_v7 }
 0x15e   :  { %v1004_v22 = vsel %vm876_vm15, %v812_v6, %v940_v12  ;;  %v1008_v32 = vsel %vm880_vm0, %v816_v59, %v944_v50  ;;  %v744_v15 = vmul.f32 %v3129_v45, %v2696_v8  ;;  %v748_v33 = vmul.f32 %v3129_v45, %v2716_v16 }
 0x15f   :  { %v1063_v58 = vpack.c.bf16 %v1007_v44, %v1003_v61  ;;  %v745_v19 = vmul.f32 %v3131_v51, %v2698_v9  ;;  %v749_v4 = vmul.f32 %v3131_v51, %v2718_v17  ;;  %v1064_v2 = vpack.c.bf16 %v1008_v32, %v1004_v22  ;;  %v3824_v9 = vld [vmem:[#allocation11_spill] sm:$0xff]  ;;  %v3826_v22 = vld [vmem:[#allocation13_spill] sm:$0xff] }
 0x160   :  { %v817_v31 = vadd.f32 %v3157_v11, %v744_v15  ;;  %v821_v10 = vadd.f32 %v3157_v11, %v748_v33  ;;  %v746_v16 = vmul.f32 %v3133_v48, %v2712_v14  ;;  %v750_v34 = vmul.f32 %v3133_v48, %v2720_v18 }
 0x161   :  { %v818_v5 = vadd.f32 %v3159_v23, %v745_v19  ;;  %v822_v8 = vadd.f32 %v3159_v23, %v749_v4  ;;  %v747_v17 = vmul.f32 %v3135_v35, %v3824_v9  ;;  %v751_v20 = vmul.f32 %v3135_v35, %v3825_v1 }
 0x162   :  { %1358 = vmatmul.bf16.gmra.mxu0 %v1061_v53  ;;  %v945_v36 = vmul.f32 0.01, %v817_v31  ;;  %v949_v43 = vmul.f32 0.01, %v821_v10  ;;  %v819_v25 = vadd.f32 %v3161_v30, %v746_v16  ;;  %v823_v37 = vadd.f32 %v3161_v30, %v750_v34  ;;  %v3827_v34 = vld [vmem:[#allocation15_spill] sm:$0xff] }
 0x163   :  { %1407 = vmatmul.bf16.gmra.mxu1 %v1062_v55  ;;  %vm881_vm1 = vcmp.ge.f32.partialorder %v817_v31, 0.0  ;;  %vm885_vm2 = vcmp.ge.f32.partialorder %v821_v10, 0.0  ;;  %v946_v6 = vmul.f32 0.01, %v818_v5  ;;  %v950_v14 = vmul.f32 0.01, %v822_v8 }
 0x164   :  { %vm882_vm3 = vcmp.ge.f32.partialorder %v818_v5, 0.0  ;;  %vm886_vm4 = vcmp.ge.f32.partialorder %v822_v8, 0.0  ;;  %v820_v18 = vadd.f32 %v3163_v27, %v747_v17  ;;  %v824_v59 = vadd.f32 %v3163_v27, %v751_v20 }
 0x165   :  { %v1009_v56 = vsel %vm881_vm1, %v817_v31, %v945_v36  ;;  %v1013_v3 = vsel %vm885_vm2, %v821_v10, %v949_v43  ;;  %v947_v60 = vmul.f32 0.01, %v819_v25  ;;  %v951_v7 = vmul.f32 0.01, %v823_v37  ;;  %v3829_v43 = vld [vmem:[#allocation16_spill] sm:$0xff] }
 0x166   :  { %1456 = vmatmul.bf16.gmra.mxu2 %v1063_v58  ;;  %v1010_v63 = vsel %vm882_vm3, %v818_v5, %v946_v6  ;;  %v1014_v57 = vsel %vm886_vm4, %v822_v8, %v950_v14  ;;  %vm883_vm5 = vcmp.ge.f32.partialorder %v819_v25, 0.0  ;;  %vm887_vm6 = vcmp.ge.f32.partialorder %v823_v37, 0.0 }
 0x167   :  { %1505 = vmatmul.bf16.gmra.mxu3 %v1064_v2  ;;  %v948_v12 = vmul.f32 0.01, %v820_v18  ;;  %v952_v50 = vmul.f32 0.01, %v824_v59  ;;  %v1065_v53 = vpack.c.bf16 %v1013_v3, %v1009_v56  ;;  %vm884_vm7 = vcmp.ge.f32.partialorder %v820_v18, 0.0 }
 0x168   :  { %vm888_vm8 = vcmp.ge.f32.partialorder %v824_v59, 0.0  ;;  %v1066_v55 = vpack.c.bf16 %v1014_v57, %v1010_v63  ;;  %v1011_v61 = vsel %vm883_vm5, %v819_v25, %v947_v60  ;;  %v1015_v44 = vsel %vm887_vm6, %v823_v37, %v951_v7 }
 0x169   :  { %v752_v32 = vmul.f32 %v3129_v45, %v3826_v22  ;;  %v1012_v15 = vsel %vm884_vm7, %v820_v18, %v948_v12  ;;  %v1016_v33 = vsel %vm888_vm8, %v824_v59, %v952_v50  ;;  %v756_v58 = vmul.f32 %v3129_v45, %v2744_v28 }
 0x16a   :  { %v1067_v19 = vpack.c.bf16 %v1015_v44, %v1011_v61  ;;  %v753_v31 = vmul.f32 %v3131_v51, %v2726_v21  ;;  %v757_v10 = vmul.f32 %v3131_v51, %v2746_v29  ;;  %v1068_v5 = vpack.c.bf16 %v1016_v33, %v1012_v15  ;;  %v3828_v21 = vld [vmem:[#allocation14_spill] sm:$0xff]  ;;  %v3830_v61 = vld [vmem:[#allocation17_spill] sm:$0xff] }
 0x16b   :  { %v825_v4 = vadd.f32 %v3157_v11, %v752_v32  ;;  %v829_v2 = vadd.f32 %v3157_v11, %v756_v58  ;;  %v754_v28 = vmul.f32 %v3133_v48, %v2740_v26  ;;  %v758_v9 = vmul.f32 %v3133_v48, %v3827_v34  ;;  %v3831_v33 = vld [vmem:[#allocation18_spill] sm:$0xff] }
 0x16c   :  { %v826_v8 = vadd.f32 %v3159_v23, %v753_v31  ;;  %v830_v16 = vadd.f32 %v3159_v23, %v757_v10  ;;  %v755_v1 = vmul.f32 %v3135_v35, %v3828_v21  ;;  %v759_v25 = vmul.f32 %v3135_v35, %v3829_v43 }
 0x16d   :  { %v953_v17 = vmul.f32 0.01, %v825_v4  ;;  %v957_v29 = vmul.f32 0.01, %v829_v2  ;;  %v827_v20 = vadd.f32 %v3161_v30, %v754_v28  ;;  %v831_v36 = vadd.f32 %v3161_v30, %v758_v9 }
 0x16e   :  { %vm889_vm9 = vcmp.ge.f32.partialorder %v825_v4, 0.0  ;;  %vm893_vm10 = vcmp.ge.f32.partialorder %v829_v2, 0.0  ;;  %v954_v37 = vmul.f32 0.01, %v826_v8  ;;  %v958_v26 = vmul.f32 0.01, %v830_v16 }
 0x16f   :  { %vm890_vm11 = vcmp.ge.f32.partialorder %v826_v8, 0.0  ;;  %vm894_vm12 = vcmp.ge.f32.partialorder %v830_v16, 0.0  ;;  %v828_v6 = vadd.f32 %v3163_v27, %v755_v1  ;;  %v832_v14 = vadd.f32 %v3163_v27, %v759_v25 }
 0x170   :  { %v1017_v18 = vsel %vm889_vm9, %v825_v4, %v953_v17  ;;  %v1021_v59 = vsel %vm893_vm10, %v829_v2, %v957_v29  ;;  %v955_v56 = vmul.f32 0.01, %v827_v20  ;;  %v959_v3 = vmul.f32 0.01, %v831_v36 }
 0x171   :  { %v1018_v60 = vsel %vm890_vm11, %v826_v8, %v954_v37  ;;  %v1022_v7 = vsel %vm894_vm12, %v830_v16, %v958_v26  ;;  %vm891_vm14 = vcmp.ge.f32.partialorder %v827_v20, 0.0  ;;  %vm895_vm15 = vcmp.ge.f32.partialorder %v831_v36, 0.0 }
 0x172   :  { %1363 = vmatmul.bf16.gmra.mxu0 %v1065_v53  ;;  %v956_v63 = vmul.f32 0.01, %v828_v6  ;;  %v960_v57 = vmul.f32 0.01, %v832_v14  ;;  %v1069_v12 = vpack.c.bf16 %v1021_v59, %v1017_v18  ;;  %vm892_vm0 = vcmp.ge.f32.partialorder %v828_v6, 0.0 }
 0x173   :  { %1412 = vmatmul.bf16.gmra.mxu1 %v1066_v55  ;;  %vm896_vm1 = vcmp.ge.f32.partialorder %v832_v14, 0.0  ;;  %v1070_v50 = vpack.c.bf16 %v1022_v7, %v1018_v60  ;;  %v1019_v53 = vsel %vm891_vm14, %v827_v20, %v955_v56  ;;  %v1023_v55 = vsel %vm895_vm15, %v831_v36, %v959_v3 }
 0x174   :  { %v760_v44 = vmul.f32 %v3129_v45, %v3830_v61  ;;  %v764_v22 = vmul.f32 %v3129_v45, %v2772_v40  ;;  %v1020_v32 = vsel %vm892_vm0, %v828_v6, %v956_v63  ;;  %v1024_v15 = vsel %vm896_vm1, %v832_v14, %v960_v57  ;;  %v3832_v61 = vld [vmem:[#allocation19_spill] sm:$0xff] }
 0x175   :  { %v761_v58 = vmul.f32 %v3131_v51, %v3831_v33  ;;  %v765_v10 = vmul.f32 %v3131_v51, %v2774_v41  ;;  %v1072_v2 = vpack.c.bf16 %v1024_v15, %v1020_v32  ;;  %v762_v8 = vmul.f32 %v3133_v48, %v2768_v38 }
 0x176   :  { %1461 = vmatmul.bf16.gmra.mxu2 %v1067_v19  ;;  %v1071_v19 = vpack.c.bf16 %v1023_v55, %v1019_v53  ;;  %v833_v4 = vadd.f32 %v3157_v11, %v760_v44  ;;  %v837_v31 = vadd.f32 %v3157_v11, %v764_v22  ;;  %v766_v16 = vmul.f32 %v3133_v48, %v2776_v42 }
 0x177   :  { %1510 = vmatmul.bf16.gmra.mxu3 %v1068_v5  ;;  %v834_v5 = vadd.f32 %v3159_v23, %v761_v58  ;;  %v838_v40 = vadd.f32 %v3159_v23, %v765_v10  ;;  %v835_v9 = vadd.f32 %v3161_v30, %v762_v8  ;;  %v763_v41 = vmul.f32 %v3135_v35, %v2770_v39 }
 0x178   :  { %v961_v28 = vmul.f32 0.01, %v833_v4  ;;  %v965_v34 = vmul.f32 0.01, %v837_v31  ;;  %v839_v17 = vadd.f32 %v3161_v30, %v766_v16  ;;  %v767_v21 = vmul.f32 %v3135_v35, %v2784_v46 }
 0x179   :  { %vm897_vm2 = vcmp.ge.f32.partialorder %v833_v4, 0.0  ;;  %vm901_vm3 = vcmp.ge.f32.partialorder %v837_v31, 0.0  ;;  %v962_v1 = vmul.f32 0.01, %v834_v5  ;;  %v966_v38 = vmul.f32 0.01, %v838_v40 }
 0x17a   :  { %vm898_vm4 = vcmp.ge.f32.partialorder %v834_v5, 0.0  ;;  %vm902_vm5 = vcmp.ge.f32.partialorder %v838_v40, 0.0  ;;  %v836_v42 = vadd.f32 %v3163_v27, %v763_v41  ;;  %v840_v29 = vadd.f32 %v3163_v27, %v767_v21 }
 0x17b   :  { %v1025_v20 = vsel %vm897_vm2, %v833_v4, %v961_v28  ;;  %v1029_v36 = vsel %vm901_vm3, %v837_v31, %v965_v34  ;;  %v963_v43 = vmul.f32 0.01, %v835_v9  ;;  %v967_v25 = vmul.f32 0.01, %v839_v17 }
 0x17c   :  { %v1026_v37 = vsel %vm898_vm4, %v834_v5, %v962_v1  ;;  %v1030_v26 = vsel %vm902_vm5, %v838_v40, %v966_v38  ;;  %vm899_vm6 = vcmp.ge.f32.partialorder %v835_v9, 0.0  ;;  %vm903_vm7 = vcmp.ge.f32.partialorder %v839_v17, 0.0 }
 0x17d   :  { %v964_v39 = vmul.f32 0.01, %v836_v42  ;;  %v968_v46 = vmul.f32 0.01, %v840_v29  ;;  %v1073_v6 = vpack.c.bf16 %v1029_v36, %v1025_v20  ;;  %vm900_vm8 = vcmp.ge.f32.partialorder %v836_v42, 0.0  ;;  %v3836_v20 = vld [vmem:[#allocation26_spill] sm:$0xff] }
 0x17e   :  { %vm904_vm9 = vcmp.ge.f32.partialorder %v840_v29, 0.0  ;;  %v1074_v14 = vpack.c.bf16 %v1030_v26, %v1026_v37  ;;  %v1027_v18 = vsel %vm899_vm6, %v835_v9, %v963_v43  ;;  %v1031_v59 = vsel %vm903_vm7, %v839_v17, %v967_v25 }
 0x17f   :  { %v768_v56 = vmul.f32 %v3129_v45, %v2786_v47  ;;  %v772_v3 = vmul.f32 %v3129_v45, %v2843_v24  ;;  %v1028_v60 = vsel %vm900_vm8, %v836_v42, %v964_v39  ;;  %v1032_v7 = vsel %vm904_vm9, %v840_v29, %v968_v46  ;;  %v3835_v42 = vld [vmem:[#allocation22_spill] sm:$0xff]  ;;  %v3837_v46 = vld [vmem:[#allocation23_spill] sm:$0xff] }
 0x180   :  { %v1075_v57 = vpack.c.bf16 %v1031_v59, %v1027_v18  ;;  %v773_v53 = vmul.f32 %v3131_v51, %v2851_v13  ;;  %v1076_v47 = vpack.c.bf16 %v1032_v7, %v1028_v60  ;;  %v770_v44 = vmul.f32 %v3133_v48, %v3832_v61  ;;  %v3833_v13 = vld [vmem:[#allocation20_spill] sm:$0xff] }
 0x181   :  { %v841_v63 = vadd.f32 %v3157_v11, %v768_v56  ;;  %v774_v22 = vmul.f32 %v3133_v48, %v2877_v54  ;;  %v771_v58 = vmul.f32 %v3135_v35, %v3833_v13  ;;  %v776_v29 = vmul.f32 %v3129_v45, %v3835_v42  ;;  %v3839_v60 = vld [vmem:[#allocation24_spill] sm:$0xff] }
 0x182   :  { %1368 = vmatmul.bf16.gmra.mxu0 %v1069_v12  ;;  %v845_v12 = vadd.f32 %v3157_v11, %v772_v3  ;;  %v846_v24 = vadd.f32 %v3159_v23, %v773_v53  ;;  %v780_v36 = vmul.f32 %v3129_v45, %v3836_v20  ;;  %v778_v7 = vmul.f32 %v3133_v48, %v3839_v60 }
 0x183   :  { %1417 = vmatmul.bf16.gmra.mxu1 %v1070_v50  ;;  %v769_v50 = vmul.f32 %v3131_v51, %v2790_v49  ;;  %v969_v32 = vmul.f32 0.01, %v841_v63  ;;  %v843_v49 = vadd.f32 %v3161_v30, %v770_v44  ;;  %v847_v33 = vadd.f32 %v3161_v30, %v774_v22 }
 0x184   :  { %v973_v15 = vmul.f32 0.01, %v845_v12  ;;  %vm905_vm10 = vcmp.ge.f32.partialorder %v841_v63, 0.0  ;;  %vm909_vm11 = vcmp.ge.f32.partialorder %v845_v12, 0.0  ;;  %v974_v10 = vmul.f32 0.01, %v846_v24 }
 0x185   :  { %v842_v55 = vadd.f32 %v3159_v23, %v769_v50  ;;  %vm910_vm14 = vcmp.ge.f32.partialorder %v846_v24, 0.0  ;;  %v844_v54 = vadd.f32 %v3163_v27, %v771_v58  ;;  %v1033_v5 = vsel %vm905_vm10, %v841_v63, %v969_v32 }
 0x186   :  { %1466 = vmatmul.bf16.gmra.mxu2 %v1071_v19  ;;  %v3834_v19 = vld [vmem:[#allocation21_spill] sm:$0xff]  ;;  %v1037_v40 = vsel %vm909_vm11, %v845_v12, %v973_v15  ;;  %v971_v8 = vmul.f32 0.01, %v843_v49  ;;  %v975_v16 = vmul.f32 0.01, %v847_v33  ;;  %v1038_v34 = vsel %vm910_vm14, %v846_v24, %v974_v10 }
 0x187   :  { %1515 = vmatmul.bf16.gmra.mxu3 %v1072_v2  ;;  %v775_v4 = vmul.f32 %v3135_v35, %v3834_v19  ;;  %v970_v31 = vmul.f32 0.01, %v842_v55  ;;  %vm906_vm12 = vcmp.ge.f32.partialorder %v842_v55, 0.0  ;;  %vm907_vm15 = vcmp.ge.f32.partialorder %v843_v49, 0.0 }
 0x188   :  { %vm911_vm0 = vcmp.ge.f32.partialorder %v847_v33, 0.0  ;;  %v972_v9 = vmul.f32 0.01, %v844_v54  ;;  %v1077_v41 = vpack.c.bf16 %v1037_v40, %v1033_v5  ;;  %vm908_vm1 = vcmp.ge.f32.partialorder %v844_v54, 0.0 }
 0x189   :  { %v848_v2 = vadd.f32 %v3163_v27, %v775_v4  ;;  %v1034_v28 = vsel %vm906_vm12, %v842_v55, %v970_v31  ;;  %v1035_v1 = vsel %vm907_vm15, %v843_v49, %v971_v8  ;;  %v1039_v38 = vsel %vm911_vm0, %v847_v33, %v975_v16  ;;  %v3842_v16 = vld [vmem:[#allocation31_spill] sm:$0xff] }
 0x18a   :  { %v1078_v21 = vpack.c.bf16 %v1038_v34, %v1034_v28  ;;  %v1036_v43 = vsel %vm908_vm1, %v844_v54, %v972_v9  ;;  %v849_v37 = vadd.f32 %v3157_v11, %v776_v29  ;;  %v1079_v26 = vpack.c.bf16 %v1039_v38, %v1035_v1 }
 0x18b   :  { %v976_v17 = vmul.f32 0.01, %v848_v2  ;;  %vm912_vm2 = vcmp.ge.f32.partialorder %v848_v2, 0.0  ;;  %v853_v39 = vadd.f32 %v3157_v11, %v780_v36  ;;  %v782_v63 = vmul.f32 %v3133_v48, %v2954_v62  ;;  %v3845_v36 = vld [vmem:[#allocation33_spill] sm:$0xff] }
 0x18c   :  { %v851_v50 = vadd.f32 %v3161_v30, %v778_v7  ;;  %v783_v24 = vmul.f32 %v3135_v35, %v2961_v0  ;;  %vm913_vm3 = vcmp.ge.f32.partialorder %v849_v37, 0.0  ;;  %v788_v28 = vmul.f32 %v3129_v45, %v3842_v16 }
 0x18d   :  { %v1040_v25 = vsel %vm912_vm2, %v848_v2, %v976_v17  ;;  %v981_v12 = vmul.f32 0.01, %v853_v39  ;;  %v855_v53 = vadd.f32 %v3161_v30, %v782_v63  ;;  %vm917_vm4 = vcmp.ge.f32.partialorder %v853_v39, 0.0  ;;  %v3841_v2 = vld [vmem:[#allocation28_spill] sm:$0xff]  ;;  %v3843_v17 = vld [vmem:[#allocation29_spill] sm:$0xff] }
 0x18e   :  { %v1080_v59 = vpack.c.bf16 %v1040_v25, %v1036_v43  ;;  %v856_v22 = vadd.f32 %v3163_v27, %v783_v24  ;;  %v979_v49 = vmul.f32 0.01, %v851_v50  ;;  %vm915_vm7 = vcmp.ge.f32.partialorder %v851_v50, 0.0  ;;  %v3846_v25 = vld [vmem:[#allocation34_spill] sm:$0xff] }
 0x18f   :  { %v1045_v15 = vsel %vm917_vm4, %v853_v39, %v981_v12  ;;  %v983_v33 = vmul.f32 0.01, %v855_v53  ;;  %vm919_vm8 = vcmp.ge.f32.partialorder %v855_v53, 0.0  ;;  %v784_v5 = vmul.f32 %v3129_v45, %v3841_v2 }
 0x190   :  { %v984_v0 = vmul.f32 0.01, %v856_v22  ;;  %vm920_vm10 = vcmp.ge.f32.partialorder %v856_v22, 0.0  ;;  %v1043_v10 = vsel %vm915_vm7, %v851_v50, %v979_v49  ;;  %v861_v38 = vadd.f32 %v3157_v11, %v788_v28 }
 0x191   :  { %v1047_v54 = vsel %vm919_vm8, %v855_v53, %v983_v33  ;;  %v857_v9 = vadd.f32 %v3157_v11, %v784_v5  ;;  %v786_v45 = vmul.f32 %v3133_v48, %v2995_v52  ;;  %v790_v43 = vmul.f32 %v3133_v48, %v3845_v36 }
 0x192   :  { %1373 = vmatmul.bf16.gmra.mxu0 %v1073_v6  ;;  %v777_v6 = vmul.f32 %v3131_v51, %v3837_v46  ;;  %v1048_v8 = vsel %vm920_vm10, %v856_v22, %v984_v0  ;;  %v1083_v34 = vpack.c.bf16 %v1047_v54, %v1043_v10  ;;  %v3847_v46 = vld [vmem:[#allocation30_spill] sm:$0xff]  ;;  %vm925_vm12 = vcmp.ge.f32.partialorder %v861_v38, 0.0 }
 0x193   :  { %1422 = vmatmul.bf16.gmra.mxu1 %v1074_v14  ;;  %v3838_v14 = vld [vmem:[#allocation27_spill] sm:$0xff]  ;;  %v859_v11 = vadd.f32 %v3161_v30, %v786_v45  ;;  %v863_v39 = vadd.f32 %v3161_v30, %v790_v43  ;;  %vm921_vm11 = vcmp.ge.f32.partialorder %v857_v9, 0.0  ;;  %vm1541_vm4 = vcmask 130048  }
 0x194   :  { %v781_v18 = vmul.f32 %v3131_v51, %v3838_v14  ;;  %v850_v56 = vadd.f32 %v3159_v23, %v777_v6  ;;  %v787_v6 = vmul.f32 %v3135_v35, %v3847_v46  ;;  %v1558_v54 = vlaneseq }
 0x195   :  { %vm923_vm0 = vcmp.ge.f32.partialorder %v859_v11, 0.0  ;;  %vm927_vm1 = vcmp.ge.f32.partialorder %v863_v39, 0.0 }
 0x196   :  { %1471 = vmatmul.bf16.gmra.mxu2 %v1075_v57  ;;  %v854_v3 = vadd.f32 %v3159_v23, %v781_v18  ;;  %v977_v57 = vmul.f32 0.01, %v849_v37  ;;  %v978_v61 = vmul.f32 0.01, %v850_v56  ;;  %vm914_vm5 = vcmp.ge.f32.partialorder %v850_v56, 0.0 }
 0x197   :  { %1520 = vmatmul.bf16.gmra.mxu3 %v1076_v47  ;;  %v3840_v47 = vld [vmem:[#allocation25_spill] sm:$0xff]  ;;  %v860_v48 = vadd.f32 %v3163_v27, %v787_v6 }
 0x198   :  { %v779_v55 = vmul.f32 %v3135_v35, %v3840_v47  ;;  %v982_v44 = vmul.f32 0.01, %v854_v3  ;;  %vm918_vm6 = vcmp.ge.f32.partialorder %v854_v3, 0.0  ;;  %v1041_v32 = vsel %vm913_vm3, %v849_v37, %v977_v57 }
 0x199   :  { %v1042_v13 = vsel %vm914_vm5, %v850_v56, %v978_v61  ;;  %v1081_v4 = vpack.c.bf16 %v1045_v15, %v1041_v32  ;;  %v791_v37 = vmul.f32 %v3135_v35, %v3846_v25  ;;  %v987_v56 = vmul.f32 0.01, %v859_v11 }
 0x19a   :  { %v852_v62 = vadd.f32 %v3163_v27, %v779_v55  ;;  %v1046_v58 = vsel %vm918_vm6, %v854_v3, %v982_v44  ;;  %v991_v3 = vmul.f32 0.01, %v863_v39  ;;  %v988_v30 = vmul.f32 0.01, %v860_v48 }
 0x19b   :  { %v1082_v31 = vpack.c.bf16 %v1046_v58, %v1042_v13  ;;  %v864_v14 = vadd.f32 %v3163_v27, %v791_v37  ;;  %vm924_vm2 = vcmp.ge.f32.partialorder %v860_v48, 0.0  ;;  %v1051_v12 = vsel %vm923_vm0, %v859_v11, %v987_v56 }
 0x19c   :  { %v980_v19 = vmul.f32 0.01, %v852_v62  ;;  %vm916_vm9 = vcmp.ge.f32.partialorder %v852_v62, 0.0  ;;  %v1055_v50 = vsel %vm927_vm1, %v863_v39, %v991_v3  ;;  %v1052_v53 = vsel %vm924_vm2, %v860_v48, %v988_v30 }
 0x19d   :  { %v992_v35 = vmul.f32 0.01, %v864_v14  ;;  %vm928_vm3 = vcmp.ge.f32.partialorder %v864_v14, 0.0  ;;  %v1087_v47 = vpack.c.bf16 %v1055_v50, %v1051_v12 }
 0x19e   :  { %v1044_v40 = vsel %vm916_vm9, %v852_v62, %v980_v19 }
 0x19f   :  { %v1084_v42 = vpack.c.bf16 %v1048_v8, %v1044_v40  ;;  %v1056_v27 = vsel %vm928_vm3, %v864_v14, %v992_v35  ;;  %v3353_v8 = vand.u32 127, %v1558_v54 }
 0x1a0   :  { %v1088_v55 = vpack.c.bf16 %v1056_v27, %v1052_v53 }
 0x1a1   :  { %vm1570_vm5 = vcmp.eq.s32.totalorder %v3353_v8, 0  ;;  %vm3780_vm6 = vcmp.eq.s32.totalorder %v3353_v8, 1  ;;  %vm3781_vm7 = vcmp.eq.s32.totalorder %v3353_v8, 2  ;;  %vm1669_vm8 = vcmp.eq.s32.totalorder %v3353_v8, 3 }
 0x1a2   :  { %1378 = vmatmul.bf16.gmra.mxu0 %v1077_v41  ;;  %v785_v41 = vmul.f32 %v3131_v51, %v3843_v17  ;;  %vm1703_vm9 = vcmp.eq.s32.totalorder %v3353_v8, 4  ;;  %vm1736_vm10 = vcmp.eq.s32.totalorder %v3353_v8, 5  ;;  %vm3782_vm0 = vcmp.eq.s32.totalorder %v3353_v8, 10 }
 0x1a3   :  { %1427 = vmatmul.bf16.gmra.mxu1 %v1078_v21  ;;  %v3844_v21 = vld [vmem:[#allocation32_spill] sm:$0xff]  ;;  %vm1935_vm1 = vcmp.eq.s32.totalorder %v3353_v8, 11  ;;  %vm1969_vm2 = vcmp.eq.s32.totalorder %v3353_v8, 12  ;;  %vm2002_vm3 = vcmp.eq.s32.totalorder %v3353_v8, 13  ;;  %vm2035_vm13 = vcmp.eq.s32.totalorder %v3353_v8, 14 }
 0x1a4   :  { %v789_v1 = vmul.f32 %v3131_v51, %v3844_v21  ;;  %v858_v29 = vadd.f32 %v3159_v23, %v785_v41  ;;  %v989_v51 = vmul.f32 0.01, %v861_v38 }
 0x1a6   :  { %1476 = vmatmul.bf16.gmra.mxu2 %v1079_v26  ;;  %v862_v20 = vadd.f32 %v3159_v23, %v789_v1  ;;  %v985_v26 = vmul.f32 0.01, %v857_v9  ;;  %v986_v23 = vmul.f32 0.01, %v858_v29  ;;  %vm922_vm14 = vcmp.ge.f32.partialorder %v858_v29, 0.0 }
 0x1a7   :  { %1525 = vmatmul.bf16.gmra.mxu3 %v1080_v59  ;;  %v1053_v59 = vsel %vm925_vm12, %v861_v38, %v989_v51  ;;  %vm1802_vm12 = vcmp.eq.s32.totalorder %v3353_v8, 7 }
 0x1a8   :  { %v990_v52 = vmul.f32 0.01, %v862_v20  ;;  %vm926_vm15 = vcmp.ge.f32.partialorder %v862_v20, 0.0  ;;  %v1049_v18 = vsel %vm921_vm11, %v857_v9, %v985_v26  ;;  %v1050_v60 = vsel %vm922_vm14, %v858_v29, %v986_v23 }
 0x1a9   :  { %v1085_v63 = vpack.c.bf16 %v1053_v59, %v1049_v18  ;;  %vm1769_vm11 = vcmp.eq.s32.totalorder %v3353_v8, 6  ;;  %vm1836_vm14 = vcmp.eq.s32.totalorder %v3353_v8, 8 }
 0x1aa   :  { %v1054_v7 = vsel %vm926_vm15, %v862_v20, %v990_v52  ;;  %vm1869_vm15 = vcmp.eq.s32.totalorder %v3353_v8, 9 }
 0x1ab   :  { %v1086_v57 = vpack.c.bf16 %v1054_v7, %v1050_v60 }
 0x1b2   :  { %1383 = vmatmul.bf16.gmra.mxu0 %v1081_v4 }
 0x1b3   :  { %1432 = vmatmul.bf16.gmra.mxu1 %v1082_v31 }
 0x1b6   :  { %1481 = vmatmul.bf16.gmra.mxu2 %v1083_v34 }
 0x1b7   :  { %1530 = vmatmul.bf16.gmra.mxu3 %v1084_v42 }
 0x1c2   :  { %1388 = vmatmul.bf16.gmra.mxu0 %v1085_v63 }
 0x1c3   :  { %1437 = vmatmul.bf16.gmra.mxu1 %v1086_v57 }
 0x1c6   :  { %1486 = vmatmul.bf16.gmra.mxu2 %v1087_v47 }
 0x1c7   :  { %1535 = vmatmul.bf16.gmra.mxu3 %v1088_v55 }
 0x1cf   :  { %v1354_v24 = vpop.f32.mrf.mxu0 }
 0x1d0   :  { %v1403_v61 = vpop.f32.mrf.mxu1 }
 0x1d1   :  { %v1404_v62 = vadd.f32 %v1403_v61, %v1354_v24 }
 0x1d7   :  { %v1356_v44 = vpop.f32.mrf.mxu0 }
 0x1d8   :  { %v1405_v22 = vpop.f32.mrf.mxu1 }
 0x1d9   :  { %v1452_v32 = vpop.f32.mrf.mxu2  ;;  %v1406_v58 = vadd.f32 %v1405_v22, %v1356_v44 }
 0x1da   :  { %v1453_v15 = vadd.f32 %v1452_v32, %v1404_v62  ;;  %v1501_v49 = vpop.f32.mrf.mxu3 }
 0x1dc   :  { %v1502_v33 = vadd.f32 %v1501_v49, %v1453_v15 }
 0x1de   :  { %1542 = vst.msk [vmem:[#allocation2] sm:$0xff] %vm1541_vm4, %v1502_v33 }
 0x1df   :  { %v1359_v13 = vpop.f32.mrf.mxu0 }
 0x1e0   :  { %v1408_v19 = vpop.f32.mrf.mxu1 }
 0x1e1   :  { %v1454_v0 = vpop.f32.mrf.mxu2  ;;  %v1409_v5 = vadd.f32 %v1408_v19, %v1359_v13 }
 0x1e2   :  { %v1455_v4 = vadd.f32 %v1454_v0, %v1406_v58  ;;  %v1503_v31 = vpop.f32.mrf.mxu3 }
 0x1e4   :  { %v1504_v10 = vadd.f32 %v1503_v31, %v1455_v4 }
 0x1e5   :  { %v1560_v16 = vld [vmem:[#allocation2] sm:$0x1f] }
 0x1e6   :  { %1543 = vst.msk [vmem:[#allocation2 + $0x8] sm:$0xff] %vm1541_vm4, %v1504_v10  ;;  %v1593_v28 = vld [vmem:[#allocation2 + $0x1] sm:$0x1f]  ;;  %v1573_v21 = vsel %vm1570_vm5, %v1560_v16, 0.0 }
 0x1e7   :  { %v1361_v2 = vpop.f32.mrf.mxu0  ;;  %v1626_v17 = vld [vmem:[#allocation2 + $0x2] sm:$0x1f]  ;;  %v1606_v1 = vsel %vm3780_vm6, %v1593_v28, 0.0 }
 0x1e8   :  { %v1410_v40 = vpop.f32.mrf.mxu1  ;;  %v1616_v42 = vadd.f32 %v1606_v1, %v1573_v21  ;;  %v1659_v29 = vld [vmem:[#allocation2 + $0x3] sm:$0x1f]  ;;  %v1639_v20 = vsel %vm3781_vm7, %v1626_v17, 0.0 }
 0x1e9   :  { %v1457_v34 = vpop.f32.mrf.mxu2  ;;  %v1672_v25 = vsel %vm1669_vm8, %v1659_v29, 0.0  ;;  %v1411_v51 = vadd.f32 %v1410_v40, %v1361_v2 }
 0x1ea   :  { %v1458_v9 = vadd.f32 %v1457_v34, %v1409_v5  ;;  %v1506_v41 = vpop.f32.mrf.mxu3  ;;  %v1649_v36 = vadd.f32 %v1639_v20, %v1616_v42 }
 0x1ec   :  { %v1507_v38 = vadd.f32 %v1506_v41, %v1458_v9  ;;  %v1682_v39 = vadd.f32 %v1672_v25, %v1649_v36 }
 0x1ed   :  { %v1693_v45 = vld [vmem:[#allocation2 + $0x8] sm:$0x1f] }
 0x1ee   :  { %1544 = vst.msk [vmem:[#allocation2 + $0x10] sm:$0xff] %vm1541_vm4, %v1507_v38  ;;  %v1706_v37 = vsel %vm1703_vm9, %v1693_v45, 0.0  ;;  %v1726_v26 = vld [vmem:[#allocation2 + $0x9] sm:$0x1f] }
 0x1ef   :  { %v1364_v43 = vpop.f32.mrf.mxu0  ;;  %v1759_v46 = vld [vmem:[#allocation2 + $0xa] sm:$0x1f]  ;;  %v1716_v48 = vadd.f32 %v1706_v37, %v1682_v39  ;;  %v1739_v7 = vsel %vm1736_vm10, %v1726_v26, 0.0 }
 0x1f0   :  { %v1413_v11 = vpop.f32.mrf.mxu1  ;;  %v1561_v6 = vld [vmem:[#allocation2 + $0x8] sm:$0x1f]  ;;  %v1772_v30 = vsel %vm1769_vm11, %v1759_v46, 0.0 }
 0x1f1   :  { %v1459_v23 = vpop.f32.mrf.mxu2  ;;  %v1594_v52 = vld [vmem:[#allocation2 + $0x9] sm:$0x1f]  ;;  %v1574_v59 = vsel %vm1570_vm5, %v1561_v6, 0.0  ;;  %v1749_v12 = vadd.f32 %v1739_v7, %v1716_v48  ;;  %v1414_v15 = vadd.f32 %v1413_v11, %v1364_v43 }
 0x1f2   :  { %v1460_v14 = vadd.f32 %v1459_v23, %v1411_v51  ;;  %v1792_v18 = vld [vmem:[#allocation2 + $0xb] sm:$0x1f]  ;;  %v1607_v56 = vsel %vm3780_vm6, %v1594_v52, 0.0  ;;  %v1508_v60 = vpop.f32.mrf.mxu3 }
 0x1f3   :  { %v1627_v3 = vld [vmem:[#allocation2 + $0xa] sm:$0x1f]  ;;  %v1617_v35 = vadd.f32 %v1607_v56, %v1574_v59  ;;  %v1805_v53 = vsel %vm1802_vm12, %v1792_v18, 0.0  ;;  %v1782_v55 = vadd.f32 %v1772_v30, %v1749_v12 }
 0x1f4   :  { %v1660_v63 = vld [vmem:[#allocation2 + $0xb] sm:$0x1f]  ;;  %v1509_v57 = vadd.f32 %v1508_v60, %v1460_v14  ;;  %v1640_v50 = vsel %vm3781_vm7, %v1627_v3, 0.0 }
 0x1f5   :  { %v1826_v27 = vld [vmem:[#allocation2 + $0x10] sm:$0x1f]  ;;  %v1650_v47 = vadd.f32 %v1640_v50, %v1617_v35  ;;  %v1673_v24 = vsel %vm1669_vm8, %v1660_v63, 0.0  ;;  %v1815_v33 = vadd.f32 %v1805_v53, %v1782_v55 }
 0x1f6   :  { %1545 = vst.msk [vmem:[#allocation2 + $0x18] sm:$0xff] %vm1541_vm4, %v1509_v57  ;;  %v1839_v44 = vsel %vm1836_vm14, %v1826_v27, 0.0  ;;  %v1694_v22 = vld [vmem:[#allocation2 + $0x10] sm:$0x1f] }
 0x1f7   :  { %v1366_v61 = vpop.f32.mrf.mxu0  ;;  %v1683_v62 = vadd.f32 %v1673_v24, %v1650_v47  ;;  %v1727_v32 = vld [vmem:[#allocation2 + $0x11] sm:$0x1f]  ;;  %v1707_v19 = vsel %vm1703_vm9, %v1694_v22, 0.0  ;;  %v1849_v40 = vadd.f32 %v1839_v44, %v1815_v33 }
 0x1f8   :  { %v1415_v49 = vpop.f32.mrf.mxu1  ;;  %v1859_v13 = vld [vmem:[#allocation2 + $0x11] sm:$0x1f]  ;;  %v1740_v0 = vsel %vm1736_vm10, %v1727_v32, 0.0 }
 0x1f9   :  { %v1892_v58 = vld [vmem:[#allocation2 + $0x12] sm:$0x1f]  ;;  %v1462_v4 = vpop.f32.mrf.mxu2  ;;  %v1717_v31 = vadd.f32 %v1707_v19, %v1683_v62  ;;  %v1872_v17 = vsel %vm1869_vm15, %v1859_v13, 0.0  ;;  %v1416_v23 = vadd.f32 %v1415_v49, %v1366_v61 }
 0x1fa   :  { %v1760_v10 = vld [vmem:[#allocation2 + $0x12] sm:$0x1f]  ;;  %v1463_v5 = vadd.f32 %v1462_v4, %v1414_v15  ;;  %v1511_v9 = vpop.f32.mrf.mxu3  ;;  %v1905_v41 = vsel %vm3782_vm0, %v1892_v58, 0.0  ;;  %v1882_v20 = vadd.f32 %v1872_v17, %v1849_v40 }
 0x1fb   :  { %v1562_v54 = vld [vmem:[#allocation2 + $0x10] sm:$0x1f]  ;;  %v1750_v1 = vadd.f32 %v1740_v0, %v1717_v31  ;;  %v1773_v45 = vsel %vm1769_vm11, %v1760_v10, 0.0 }
 0x1fc   :  { %v1595_v2 = vld [vmem:[#allocation2 + $0x11] sm:$0x1f]  ;;  %v1575_v16 = vsel %vm1570_vm5, %v1562_v54, 0.0  ;;  %v1512_v29 = vadd.f32 %v1511_v9, %v1463_v5  ;;  %v1915_v39 = vadd.f32 %v1905_v41, %v1882_v20 }
 0x1fd   :  { %v1608_v28 = vsel %vm3780_vm6, %v1595_v2, 0.0  ;;  %v1628_v34 = vld [vmem:[#allocation2 + $0x12] sm:$0x1f]  ;;  %v1959_v25 = vld [vmem:[#allocation2 + $0x18] sm:$0x1f]  ;;  %v1783_v51 = vadd.f32 %v1773_v45, %v1750_v1  ;;  %vm3783_vm6 = vcmp.eq.s32.totalorder %v3353_v8, 15 }
 0x1fe   :  { %v1925_v21 = vld [vmem:[#allocation2 + $0x13] sm:$0x1f]  ;;  %v1618_v42 = vadd.f32 %v1608_v28, %v1575_v16  ;;  %v1641_v36 = vsel %vm3781_vm7, %v1628_v34, 0.0  ;;  %v1992_v37 = vld [vmem:[#allocation2 + $0x19] sm:$0x1f]  ;;  %1546 = vst.msk [vmem:[#allocation2 + $0x20] sm:$0xff] %vm1541_vm4, %v1512_v29 }
 0x1ff   :  { %v1793_v38 = vld [vmem:[#allocation2 + $0x13] sm:$0x1f]  ;;  %v2025_v26 = vld [vmem:[#allocation2 + $0x1a] sm:$0x1f]  ;;  %v1938_v46 = vsel %vm1935_vm1, %v1925_v21, 0.0  ;;  %v1369_v52 = vpop.f32.mrf.mxu0  ;;  %v1972_v14 = vsel %vm1969_vm2, %v1959_v25, 0.0 }
 0x200   :  { %v1661_v43 = vld [vmem:[#allocation2 + $0x13] sm:$0x1f]  ;;  %v1651_v11 = vadd.f32 %v1641_v36, %v1618_v42  ;;  %v1806_v6 = vsel %vm1802_vm12, %v1793_v38, 0.0  ;;  %vm2091_vm7 = vcmask 126976   ;;  %v1827_v18 = vld [vmem:[#allocation2 + $0x18] sm:$0x1f]  ;;  %v1418_v3 = vpop.f32.mrf.mxu1  ;;  %v1948_v60 = vadd.f32 %v1938_v46, %v1915_v39 }
 0x201   :  { %v1816_v48 = vadd.f32 %v1806_v6, %v1783_v51  ;;  %v1860_v59 = vld [vmem:[#allocation2 + $0x19] sm:$0x1f]  ;;  %v1674_v56 = vsel %vm1669_vm8, %v1661_v43, 0.0  ;;  %v2005_v7 = vsel %vm2002_vm3, %v1992_v37, 0.0  ;;  %v2038_v30 = vsel %vm2035_vm13, %v2025_v26, 0.0  ;;  %v1464_v57 = vpop.f32.mrf.mxu2 }
 0x202   :  { %v1840_v35 = vsel %vm1836_vm14, %v1827_v18, 0.0  ;;  %v1893_v63 = vld [vmem:[#allocation2 + $0x1a] sm:$0x1f]  ;;  %v1873_v50 = vsel %vm1869_vm15, %v1860_v59, 0.0  ;;  %v1684_v27 = vadd.f32 %v1674_v56, %v1651_v11  ;;  %v1465_v24 = vadd.f32 %v1464_v57, %v1416_v23  ;;  %v1513_v15 = vpop.f32.mrf.mxu3 }
 0x203   :  { %v1850_v12 = vadd.f32 %v1840_v35, %v1816_v48  ;;  %v1906_v53 = vsel %vm3782_vm0, %v1893_v63, 0.0  ;;  %v1695_v47 = vld [vmem:[#allocation2 + $0x18] sm:$0x1f]  ;;  %v1982_v61 = vadd.f32 %v1972_v14, %v1948_v60  ;;  %vm3848_vm0 = vcmp.eq.s32.totalorder %v3353_v8, 1 }
 0x204   :  { %v1728_v55 = vld [vmem:[#allocation2 + $0x19] sm:$0x1f]  ;;  %v1708_v22 = vsel %vm1703_vm9, %v1695_v47, 0.0  ;;  %v1514_v0 = vadd.f32 %v1513_v15, %v1465_v24  ;;  %v1419_v38 = vadd.f32 %v1418_v3, %v1369_v52 }
 0x205   :  { %v2058_v44 = vld [vmem:[#allocation2 + $0x1b] sm:$0x1f]  ;;  %v1741_v32 = vsel %vm1736_vm10, %v1728_v55, 0.0  ;;  %v1883_v49 = vadd.f32 %v1873_v50, %v1850_v12  ;;  %v1718_v33 = vadd.f32 %v1708_v22, %v1684_v27  ;;  %v2015_v4 = vadd.f32 %v2005_v7, %v1982_v61  ;;  %v1960_v40 = vld [vmem:[#allocation2 + $0x20] sm:$0x1f] }
 0x206   :  { %v1926_v62 = vld [vmem:[#allocation2 + $0x1b] sm:$0x1f]  ;;  %v2071_v2 = vsel %vm3783_vm6, %v2058_v44, 0.0  ;;  %1547 = vst.msk [vmem:[#allocation2 + $0x28] sm:$0xff] %vm1541_vm4, %v1514_v0  ;;  %v1973_v41 = vsel %vm1969_vm2, %v1960_v40, 0.0 }
 0x207   :  { %v1761_v13 = vld [vmem:[#allocation2 + $0x1a] sm:$0x1f]  ;;  %v1916_v5 = vadd.f32 %v1906_v53, %v1883_v49  ;;  %v1751_v16 = vadd.f32 %v1741_v32, %v1718_v33  ;;  %v2048_v9 = vadd.f32 %v2038_v30, %v2015_v4  ;;  %v1939_v17 = vsel %vm1935_vm1, %v1926_v62, 0.0  ;;  %v1371_v42 = vpop.f32.mrf.mxu0  ;;  %v1993_v20 = vld [vmem:[#allocation2 + $0x21] sm:$0x1f] }
 0x208   :  { %v1563_v58 = vld [vmem:[#allocation2 + $0x18] sm:$0x1f]  ;;  %v1774_v21 = vsel %vm1769_vm11, %v1761_v13, 0.0  ;;  %v1828_v36 = vld [vmem:[#allocation2 + $0x20] sm:$0x1f]  ;;  %v1420_v37 = vpop.f32.mrf.mxu1  ;;  %v2006_v59 = vsel %vm2002_vm3, %v1993_v20, 0.0 }
 0x209   :  { %v1596_v19 = vld [vmem:[#allocation2 + $0x19] sm:$0x1f]  ;;  %v1576_v31 = vsel %vm1570_vm5, %v1563_v58, 0.0  ;;  %v1949_v29 = vadd.f32 %v1939_v17, %v1916_v5  ;;  %v1784_v45 = vadd.f32 %v1774_v21, %v1751_v16  ;;  %v2081_v25 = vadd.f32 %v2071_v2, %v2048_v9  ;;  %v1467_v39 = vpop.f32.mrf.mxu2  ;;  %v2026_v6 = vld [vmem:[#allocation2 + $0x22] sm:$0x1f] }
 0x20a   :  { %v1609_v10 = vsel %vm3848_vm0, %v1596_v19, 0.0  ;;  %v1629_v54 = vld [vmem:[#allocation2 + $0x1a] sm:$0x1f]  ;;  %vm3849_vm0 = vcmp.eq.s32.totalorder %v3353_v8, 2  ;;  %v1841_v51 = vsel %vm1836_vm14, %v1828_v36, 0.0  ;;  %v1468_v18 = vadd.f32 %v1467_v39, %v1419_v38  ;;  %v1516_v60 = vpop.f32.mrf.mxu3 }
 0x20b   :  { %v1794_v28 = vld [vmem:[#allocation2 + $0x1b] sm:$0x1f]  ;;  %v1619_v34 = vadd.f32 %v1609_v10, %v1576_v31  ;;  %v1642_v43 = vsel %vm3849_vm0, %v1629_v54, 0.0  ;;  %v1983_v46 = vadd.f32 %v1973_v41, %v1949_v29  ;;  %v1861_v52 = vld [vmem:[#allocation2 + $0x21] sm:$0x1f]  ;;  %v2092_v48 = vsel %vm2091_vm7, %v2081_v25, 0.0 }
 0x20c   :  { %v1662_v1 = vld [vmem:[#allocation2 + $0x1b] sm:$0x1f]  ;;  %v1807_v26 = vsel %vm1802_vm12, %v1794_v28, 0.0  ;;  %v1696_v14 = vld [vmem:[#allocation2 + $0x20] sm:$0x1f]  ;;  %2093 = vadd.xlane.f32.xlu0 %v2092_v48  ;;  %v1517_v50 = vadd.f32 %v1516_v60, %v1468_v18  ;;  %v2039_v53 = vsel %vm2035_vm13, %v2026_v6, 0.0  ;;  %v1421_v4 = vadd.f32 %v1420_v37, %v1371_v42 }
 0x20d   :  { %v1652_v11 = vadd.f32 %v1642_v43, %v1619_v34  ;;  %v1817_v23 = vadd.f32 %v1807_v26, %v1784_v45  ;;  %v2059_v56 = vld [vmem:[#allocation2 + $0x23] sm:$0x1f]  ;;  %v1675_v3 = vsel %vm1669_vm8, %v1662_v1, 0.0  ;;  %v2016_v7 = vadd.f32 %v2006_v59, %v1983_v46  ;;  %v1961_v61 = vld [vmem:[#allocation2 + $0x28] sm:$0x1f] }
 0x20e   :  { %v1894_v35 = vld [vmem:[#allocation2 + $0x22] sm:$0x1f]  ;;  %v1709_v57 = vsel %vm1703_vm9, %v1696_v14, 0.0  ;;  %v1874_v27 = vsel %vm1869_vm15, %v1861_v52, 0.0  ;;  %1548 = vst.msk [vmem:[#allocation2 + $0x30] sm:$0xff] %vm1541_vm4, %v1517_v50  ;;  %v2072_v22 = vsel %vm3783_vm6, %v2059_v56, 0.0 }
 0x20f   :  { %v1851_v30 = vadd.f32 %v1841_v51, %v1817_v23  ;;  %v1685_v63 = vadd.f32 %v1675_v3, %v1652_v11  ;;  %v1729_v12 = vld [vmem:[#allocation2 + $0x21] sm:$0x1f]  ;;  %v2049_v47 = vadd.f32 %v2039_v53, %v2016_v7  ;;  %vm3850_vm0 = vcmp.eq.s32.totalorder %v3353_v8, 10  ;;  %v1374_v33 = vpop.f32.mrf.mxu0  ;;  %v1829_v0 = vld [vmem:[#allocation2 + $0x28] sm:$0x1f] }
 0x210   :  { %v1927_v24 = vld [vmem:[#allocation2 + $0x23] sm:$0x1f]  ;;  %v1907_v32 = vsel %vm3850_vm0, %v1894_v35, 0.0  ;;  %v1742_v15 = vsel %vm1736_vm10, %v1729_v12, 0.0  ;;  %v1423_v31 = vpop.f32.mrf.mxu1  ;;  %v1974_v54 = vsel %vm1969_vm2, %v1961_v61, 0.0  ;;  %v1842_v41 = vsel %vm1836_vm14, %v1829_v0, 0.0 }
 0x211   :  { %v1884_v55 = vadd.f32 %v1874_v27, %v1851_v30  ;;  %v1719_v44 = vadd.f32 %v1709_v57, %v1685_v63  ;;  %v1762_v62 = vld [vmem:[#allocation2 + $0x22] sm:$0x1f]  ;;  %v2082_v49 = vadd.f32 %v2072_v22, %v2049_v47  ;;  %v1940_v10 = vsel %vm1935_vm1, %v1927_v24, 0.0  ;;  %v1469_v40 = vpop.f32.mrf.mxu2  ;;  %v1994_v28 = vld [vmem:[#allocation2 + $0x29] sm:$0x1f] }
 0x212   :  { %v1795_v19 = vld [vmem:[#allocation2 + $0x23] sm:$0x1f]  ;;  %v1775_v2 = vsel %vm1769_vm11, %v1762_v62, 0.0  ;;  %v1470_v9 = vadd.f32 %v1469_v40, %v1421_v4  ;;  %v1518_v21 = vpop.f32.mrf.mxu3  ;;  %v2027_v38 = vld [vmem:[#allocation2 + $0x2a] sm:$0x1f]  ;;  %v2007_v45 = vsel %vm2002_vm3, %v1994_v28, 0.0  ;;  %v1424_v52 = vadd.f32 %v1423_v31, %v1374_v33 }
 0x213   :  { %v1917_v13 = vadd.f32 %v1907_v32, %v1884_v55  ;;  %v1752_v58 = vadd.f32 %v1742_v15, %v1719_v44  ;;  %v2095_v5 = vsel %vm2091_vm7, %v2082_v49, 0.0  ;;  %v1808_v17 = vsel %vm1802_vm12, %v1795_v19, 0.0  ;;  %v1862_v29 = vld [vmem:[#allocation2 + $0x29] sm:$0x1f] }
 0x214   :  { %2096 = vadd.xlane.f32.xlu0 %v2095_v5  ;;  %v1519_v20 = vadd.f32 %v1518_v21, %v1470_v9  ;;  %v2060_v43 = vld [vmem:[#allocation2 + $0x2b] sm:$0x1f]  ;;  %v2040_v26 = vsel %vm2035_vm13, %v2027_v38, 0.0  ;;  %v1875_v51 = vsel %vm1869_vm15, %v1862_v29, 0.0 }
 0x215   :  { %v1950_v16 = vadd.f32 %v1940_v10, %v1917_v13  ;;  %v1785_v34 = vadd.f32 %v1775_v2, %v1752_v58  ;;  %v1895_v37 = vld [vmem:[#allocation2 + $0x2a] sm:$0x1f]  ;;  %v1962_v23 = vld [vmem:[#allocation2 + $0x30] sm:$0x1f]  ;;  %v2073_v14 = vsel %vm3783_vm6, %v2060_v43, 0.0 }
 0x216   :  { %1549 = vst.msk [vmem:[#allocation2 + $0x38] sm:$0xff] %vm1541_vm4, %v1519_v20  ;;  %v1928_v6 = vld [vmem:[#allocation2 + $0x2b] sm:$0x1f]  ;;  %v1908_v18 = vsel %vm3850_vm0, %v1895_v37, 0.0  ;;  %v1975_v30 = vsel %vm1969_vm2, %v1962_v23, 0.0  ;;  %vm3851_vm0 = vcmp.eq.s32.totalorder %v3353_v8, 1 }
 0x217   :  { %v1984_v1 = vadd.f32 %v1974_v54, %v1950_v16  ;;  %v1818_v42 = vadd.f32 %v1808_v17, %v1785_v34  ;;  %v1376_v39 = vpop.f32.mrf.mxu0  ;;  %v1941_v7 = vsel %vm1935_vm1, %v1928_v6, 0.0  ;;  %v1995_v12 = vld [vmem:[#allocation2 + $0x31] sm:$0x1f] }
 0x218   :  { %v1425_v48 = vpop.f32.mrf.mxu1  ;;  %v2028_v27 = vld [vmem:[#allocation2 + $0x32] sm:$0x1f]  ;;  %v2008_v47 = vsel %vm2002_vm3, %v1995_v12, 0.0 }
 0x219   :  { %v2017_v36 = vadd.f32 %v2007_v45, %v1984_v1  ;;  %v1852_v25 = vadd.f32 %v1842_v41, %v1818_v42  ;;  %v1472_v56 = vpop.f32.mrf.mxu2  ;;  %v2061_v24 = vld [vmem:[#allocation2 + $0x33] sm:$0x1f]  ;;  %v1426_v44 = vadd.f32 %v1425_v48, %v1376_v39  ;;  %v2041_v62 = vsel %vm2035_vm13, %v2028_v27, 0.0 }
 0x21a   :  { %v1473_v60 = vadd.f32 %v1472_v56, %v1424_v52  ;;  %v1521_v63 = vpop.f32.mrf.mxu3  ;;  %v2074_v49 = vsel %vm3783_vm6, %v2061_v24, 0.0  ;;  %vm3852_vm6 = vcmp.eq.s32.totalorder %v3353_v8, 2 }
 0x21b   :  { %v2050_v11 = vadd.f32 %v2040_v26, %v2017_v36  ;;  %v1885_v46 = vadd.f32 %v1875_v51, %v1852_v25 }
 0x21c   :  { %v1522_v50 = vadd.f32 %v1521_v63, %v1473_v60 }
 0x21d   :  { %v2083_v59 = vadd.f32 %v2073_v14, %v2050_v11  ;;  %v1918_v3 = vadd.f32 %v1908_v18, %v1885_v46 }
 0x21e   :  { %1550 = vst.msk [vmem:[#allocation2 + $0x40] sm:$0xff] %vm1541_vm4, %v1522_v50 }
 0x21f   :  { %v2098_v35 = vsel %vm2091_vm7, %v2083_v59, 0.0  ;;  %v1951_v57 = vadd.f32 %v1941_v7, %v1918_v3  ;;  %v1379_v61 = vpop.f32.mrf.mxu0 }
 0x220   :  { %2099 = vadd.xlane.f32.xlu2 %v2098_v35  ;;  %v1428_v22 = vpop.f32.mrf.mxu1 }
 0x221   :  { %v1985_v53 = vadd.f32 %v1975_v30, %v1951_v57  ;;  %v1474_v15 = vpop.f32.mrf.mxu2  ;;  %v1429_v40 = vadd.f32 %v1428_v22, %v1379_v61 }
 0x222   :  { %v1475_v33 = vadd.f32 %v1474_v15, %v1426_v44  ;;  %v1523_v58 = vpop.f32.mrf.mxu3 }
 0x223   :  { %v2018_v55 = vadd.f32 %v2008_v47, %v1985_v53 }
 0x224   :  { %v1524_v19 = vadd.f32 %v1523_v58, %v1475_v33 }
 0x225   :  { %v2051_v32 = vadd.f32 %v2041_v62, %v2018_v55  ;;  %v1565_v4 = vld [vmem:[#allocation2 + $0x40] sm:$0x1f] }
 0x226   :  { %1551 = vst.msk [vmem:[#allocation2 + $0x48] sm:$0xff] %vm1541_vm4, %v1524_v19  ;;  %v1598_v31 = vld [vmem:[#allocation2 + $0x41] sm:$0x1f]  ;;  %v1578_v54 = vsel %vm1570_vm5, %v1565_v4, 0.0 }
 0x227   :  { %v2084_v13 = vadd.f32 %v2074_v49, %v2051_v32  ;;  %v1381_v10 = vpop.f32.mrf.mxu0  ;;  %v1611_v2 = vsel %vm3851_vm0, %v1598_v31, 0.0  ;;  %v1631_v5 = vld [vmem:[#allocation2 + $0x42] sm:$0x1f] }
 0x228   :  { %v1430_v16 = vpop.f32.mrf.mxu1  ;;  %v1621_v28 = vadd.f32 %v1611_v2, %v1578_v54  ;;  %v1644_v9 = vsel %vm3852_vm6, %v1631_v5, 0.0  ;;  %v1664_v17 = vld [vmem:[#allocation2 + $0x43] sm:$0x1f]  ;;  %vm3853_vm6 = vmmov %vm3851_vm0  ;;  %vm3854_vm0 = vcmp.eq.s32.totalorder %v3353_v8, 2 }
 0x229   :  { %v2101_v0 = vsel %vm2091_vm7, %v2084_v13, 0.0  ;;  %v1477_v34 = vpop.f32.mrf.mxu2  ;;  %v1677_v42 = vsel %vm1669_vm8, %v1664_v17, 0.0  ;;  %v1431_v11 = vadd.f32 %v1430_v16, %v1381_v10 }
 0x22a   :  { %2102 = vadd.xlane.f32.xlu0 %v2101_v0  ;;  %v1478_v41 = vadd.f32 %v1477_v34, %v1429_v40  ;;  %v1654_v21 = vadd.f32 %v1644_v9, %v1621_v28  ;;  %v1526_v1 = vpop.f32.mrf.mxu3 }
 0x22c   :  { %v1527_v38 = vadd.f32 %v1526_v1, %v1478_v41  ;;  %v1687_v29 = vadd.f32 %v1677_v42, %v1654_v21 }
 0x22d   :  { %v1698_v20 = vld [vmem:[#allocation2 + $0x48] sm:$0x1f] }
 0x22e   :  { %v1731_v45 = vld [vmem:[#allocation2 + $0x49] sm:$0x1f]  ;;  %1552 = vst.msk [vmem:[#allocation2 + $0x50] sm:$0xff] %vm1541_vm4, %v1527_v38  ;;  %v1711_v36 = vsel %vm1703_vm9, %v1698_v20, 0.0 }
 0x22f   :  { %v1384_v43 = vpop.f32.mrf.mxu0  ;;  %v1721_v25 = vadd.f32 %v1711_v36, %v1687_v29  ;;  %v1764_v37 = vld [vmem:[#allocation2 + $0x4a] sm:$0x1f]  ;;  %v1744_v46 = vsel %vm1736_vm10, %v1731_v45, 0.0  ;;  %v1564_v36 = vld [vmem:[#allocation2 + $0x20] sm:$0x1f] }
 0x230   :  { %v1566_v26 = vld [vmem:[#allocation2 + $0x48] sm:$0x1f]  ;;  %v1433_v39 = vpop.f32.mrf.mxu1  ;;  %v1777_v3 = vsel %vm1769_vm11, %v1764_v37, 0.0 }
 0x231   :  { %v1599_v51 = vld [vmem:[#allocation2 + $0x49] sm:$0x1f]  ;;  %v1579_v6 = vsel %vm1570_vm5, %v1566_v26, 0.0  ;;  %v1479_v14 = vpop.f32.mrf.mxu2  ;;  %v1754_v48 = vadd.f32 %v1744_v46, %v1721_v25  ;;  %v1434_v32 = vadd.f32 %v1433_v39, %v1384_v43 }
 0x232   :  { %v1612_v23 = vsel %vm3853_vm6, %v1599_v51, 0.0  ;;  %v1632_v52 = vld [vmem:[#allocation2 + $0x4a] sm:$0x1f]  ;;  %v1480_v56 = vadd.f32 %v1479_v14, %v1431_v11  ;;  %v1528_v7 = vpop.f32.mrf.mxu3  ;;  %vm3855_vm6 = vcmp.eq.s32.totalorder %v3353_v8, 10 }
 0x233   :  { %v1797_v18 = vld [vmem:[#allocation2 + $0x4b] sm:$0x1f]  ;;  %v1622_v59 = vadd.f32 %v1612_v23, %v1579_v6  ;;  %v1645_v60 = vsel %vm3854_vm0, %v1632_v52, 0.0  ;;  %v1787_v30 = vadd.f32 %v1777_v3, %v1754_v48  ;;  %vm3856_vm0 = vcmp.eq.s32.totalorder %v3353_v8, 1  ;;  %v1597_v3 = vld [vmem:[#allocation2 + $0x21] sm:$0x1f] }
 0x234   :  { %v1665_v63 = vld [vmem:[#allocation2 + $0x4b] sm:$0x1f]  ;;  %v1529_v57 = vadd.f32 %v1528_v7, %v1480_v56  ;;  %v1810_v12 = vsel %vm1802_vm12, %v1797_v18, 0.0  ;;  %v1577_v56 = vsel %vm1570_vm5, %v1564_v36, 0.0 }
 0x235   :  { %v1655_v35 = vadd.f32 %v1645_v60, %v1622_v59  ;;  %v1820_v50 = vadd.f32 %v1810_v12, %v1787_v30  ;;  %v1831_v53 = vld [vmem:[#allocation2 + $0x50] sm:$0x1f]  ;;  %v1678_v24 = vsel %vm1669_vm8, %v1665_v63, 0.0 }
 0x236   :  { %v1864_v27 = vld [vmem:[#allocation2 + $0x51] sm:$0x1f]  ;;  %1553 = vst.msk [vmem:[#allocation2 + $0x58] sm:$0xff] %vm1541_vm4, %v1529_v57  ;;  %v1844_v55 = vsel %vm1836_vm14, %v1831_v53, 0.0 }
 0x237   :  { %v1897_v47 = vld [vmem:[#allocation2 + $0x52] sm:$0x1f]  ;;  %v1854_v61 = vadd.f32 %v1844_v55, %v1820_v50  ;;  %v1688_v44 = vadd.f32 %v1678_v24, %v1655_v35  ;;  %v1386_v15 = vpop.f32.mrf.mxu0  ;;  %v1877_v49 = vsel %vm1869_vm15, %v1864_v27, 0.0 }
 0x238   :  { %v1699_v62 = vld [vmem:[#allocation2 + $0x50] sm:$0x1f]  ;;  %v1910_v33 = vsel %vm3855_vm6, %v1897_v47, 0.0  ;;  %v1435_v0 = vpop.f32.mrf.mxu1  ;;  %vm3857_vm6 = vcmp.eq.s32.totalorder %v3353_v8, 2 }
 0x239   :  { %v1732_v22 = vld [vmem:[#allocation2 + $0x51] sm:$0x1f]  ;;  %v1712_v58 = vsel %vm1703_vm9, %v1699_v62, 0.0  ;;  %v1482_v19 = vpop.f32.mrf.mxu2  ;;  %v1887_v4 = vadd.f32 %v1877_v49, %v1854_v61  ;;  %v1436_v60 = vadd.f32 %v1435_v0, %v1386_v15 }
 0x23a   :  { %v1930_v13 = vld [vmem:[#allocation2 + $0x53] sm:$0x1f]  ;;  %v1722_v31 = vadd.f32 %v1712_v58, %v1688_v44  ;;  %v1483_v5 = vadd.f32 %v1482_v19, %v1434_v32  ;;  %v1745_v40 = vsel %vm1736_vm10, %v1732_v22, 0.0  ;;  %v1531_v9 = vpop.f32.mrf.mxu3 }
 0x23b   :  { %v1765_v10 = vld [vmem:[#allocation2 + $0x52] sm:$0x1f]  ;;  %v1920_v17 = vadd.f32 %v1910_v33, %v1887_v4  ;;  %v1943_v29 = vsel %vm1935_vm1, %v1930_v13, 0.0 }
 0x23c   :  { %v1567_v54 = vld [vmem:[#allocation2 + $0x50] sm:$0x1f]  ;;  %v1755_v41 = vadd.f32 %v1745_v40, %v1722_v31  ;;  %v1532_v42 = vadd.f32 %v1531_v9, %v1483_v5  ;;  %v1778_v20 = vsel %vm1769_vm11, %v1765_v10, 0.0 }
 0x23d   :  { %v1600_v2 = vld [vmem:[#allocation2 + $0x51] sm:$0x1f]  ;;  %v1580_v16 = vsel %vm1570_vm5, %v1567_v54, 0.0  ;;  %v1953_v43 = vadd.f32 %v1943_v29, %v1920_v17  ;;  %v1964_v25 = vld [vmem:[#allocation2 + $0x58] sm:$0x1f] }
 0x23e   :  { %v1613_v28 = vsel %vm3856_vm0, %v1600_v2, 0.0  ;;  %v1633_v34 = vld [vmem:[#allocation2 + $0x52] sm:$0x1f]  ;;  %v1997_v37 = vld [vmem:[#allocation2 + $0x59] sm:$0x1f]  ;;  %v1788_v51 = vadd.f32 %v1778_v20, %v1755_v41  ;;  %1554 = vst.msk [vmem:[#allocation2 + $0x60] sm:$0xff] %vm1541_vm4, %v1532_v42 }
 0x23f   :  { %v1798_v21 = vld [vmem:[#allocation2 + $0x53] sm:$0x1f]  ;;  %v1623_v1 = vadd.f32 %v1613_v28, %v1580_v16  ;;  %v1646_v45 = vsel %vm3857_vm6, %v1633_v34, 0.0  ;;  %v2030_v26 = vld [vmem:[#allocation2 + $0x5a] sm:$0x1f]  ;;  %v1977_v39 = vsel %vm1969_vm2, %v1964_v25, 0.0  ;;  %v1389_v61 = vpop.f32.mrf.mxu0 }
 0x240   :  { %v1666_v38 = vld [vmem:[#allocation2 + $0x53] sm:$0x1f]  ;;  %v2063_v46 = vld [vmem:[#allocation2 + $0x5b] sm:$0x1f]  ;;  %v1811_v6 = vsel %vm1802_vm12, %v1798_v21, 0.0  ;;  %v1987_v52 = vadd.f32 %v1977_v39, %v1953_v43  ;;  %v2010_v14 = vsel %vm2002_vm3, %v1997_v37, 0.0  ;;  %v1438_v49 = vpop.f32.mrf.mxu1 }
 0x241   :  { %v1656_v11 = vadd.f32 %v1646_v45, %v1623_v1  ;;  %v1679_v23 = vsel %vm1669_vm8, %v1666_v38, 0.0  ;;  %v1821_v48 = vadd.f32 %v1811_v6, %v1788_v51  ;;  %v1832_v18 = vld [vmem:[#allocation2 + $0x58] sm:$0x1f]  ;;  %v2043_v7 = vsel %vm2035_vm13, %v2030_v26, 0.0  ;;  %v1484_v57 = vpop.f32.mrf.mxu2  ;;  %v1630_v54 = vld [vmem:[#allocation2 + $0x22] sm:$0x1f] }
 0x242   :  { %v1865_v59 = vld [vmem:[#allocation2 + $0x59] sm:$0x1f]  ;;  %v1845_v30 = vsel %vm1836_vm14, %v1832_v18, 0.0  ;;  %v2020_v12 = vadd.f32 %v2010_v14, %v1987_v52  ;;  %vm3858_vm0 = vcmp.eq.s32.totalorder %v3353_v8, 15  ;;  %v1485_v24 = vadd.f32 %v1484_v57, %v1436_v60  ;;  %v1533_v15 = vpop.f32.mrf.mxu3  ;;  %v1663_v17 = vld [vmem:[#allocation2 + $0x23] sm:$0x1f] }
 0x243   :  { %v1898_v35 = vld [vmem:[#allocation2 + $0x5a] sm:$0x1f]  ;;  %v2076_v50 = vsel %vm3858_vm0, %v2063_v46, 0.0  ;;  %v1855_v53 = vadd.f32 %v1845_v30, %v1821_v48  ;;  %v1689_v27 = vadd.f32 %v1679_v23, %v1656_v11  ;;  %v1878_v44 = vsel %vm1869_vm15, %v1865_v59, 0.0  ;;  %v1697_v41 = vld [vmem:[#allocation2 + $0x28] sm:$0x1f] }
 0x244   :  { %v1931_v63 = vld [vmem:[#allocation2 + $0x5b] sm:$0x1f]  ;;  %vm3859_vm6 = vcmp.eq.s32.totalorder %v3353_v8, 10  ;;  %v2053_v33 = vadd.f32 %v2043_v7, %v2020_v12  ;;  %v1534_v0 = vadd.f32 %v1533_v15, %v1485_v24  ;;  %vm3860_vm0 = vcmp.eq.s32.totalorder %v3353_v8, 1  ;;  %v1730_v60 = vld [vmem:[#allocation2 + $0x29] sm:$0x1f] }
 0x245   :  { %v1700_v47 = vld [vmem:[#allocation2 + $0x58] sm:$0x1f]  ;;  %v1911_v62 = vsel %vm3859_vm6, %v1898_v35, 0.0  ;;  %v1888_v13 = vadd.f32 %v1878_v44, %v1855_v53  ;;  %v1944_v58 = vsel %vm1935_vm1, %v1931_v63, 0.0  ;;  %v1610_v10 = vsel %vm3860_vm0, %v1597_v3, 0.0 }
 0x246   :  { %v1733_v55 = vld [vmem:[#allocation2 + $0x59] sm:$0x1f]  ;;  %v1713_v22 = vsel %vm1703_vm9, %v1700_v47, 0.0  ;;  %v2086_v2 = vadd.f32 %v2076_v50, %v2053_v33  ;;  %v1965_v40 = vld [vmem:[#allocation2 + $0x60] sm:$0x1f]  ;;  %v1620_v34 = vadd.f32 %v1610_v10, %v1577_v56  ;;  %1555 = vst.msk [vmem:[#allocation2 + $0x68] sm:$0xff] %vm1541_vm4, %v1534_v0  ;;  %v1439_v45 = vadd.f32 %v1438_v49, %v1389_v61 }
 0x247   :  { %v1766_v32 = vld [vmem:[#allocation2 + $0x5a] sm:$0x1f]  ;;  %v1723_v19 = vadd.f32 %v1713_v22, %v1689_v27  ;;  %v1746_v4 = vsel %vm1736_vm10, %v1733_v55, 0.0  ;;  %v1921_v5 = vadd.f32 %v1911_v62, %v1888_v13  ;;  %v1978_v9 = vsel %vm1969_vm2, %v1965_v40, 0.0  ;;  %v1998_v38 = vld [vmem:[#allocation2 + $0x61] sm:$0x1f]  ;;  %v1391_v63 = vpop.f32.mrf.mxu0 }
 0x248   :  { %v1779_v31 = vsel %vm1769_vm11, %v1766_v32, 0.0  ;;  %v1799_v28 = vld [vmem:[#allocation2 + $0x5b] sm:$0x1f]  ;;  %v2107_v21 = vsel %vm2091_vm7, %v2086_v2, 0.0  ;;  %v1833_v29 = vld [vmem:[#allocation2 + $0x60] sm:$0x1f]  ;;  %v1440_v57 = vpop.f32.mrf.mxu1 }
 0x249   :  { %v1756_v16 = vadd.f32 %v1746_v4, %v1723_v19  ;;  %v1954_v1 = vadd.f32 %v1944_v58, %v1921_v5  ;;  %vm3861_vm6 = vcmp.eq.s32.totalorder %v3353_v8, 2  ;;  %2108 = vadd.xlane.f32.xlu1 %v2107_v21  ;;  %v1812_v36 = vsel %vm1802_vm12, %v1799_v28, 0.0  ;;  %v1487_v37 = vpop.f32.mrf.mxu2  ;;  %v2031_v51 = vld [vmem:[#allocation2 + $0x62] sm:$0x1f]  ;;  %v1763_v55 = vld [vmem:[#allocation2 + $0x2a] sm:$0x1f] }
 0x24a   :  { %v1643_v20 = vsel %vm3861_vm6, %v1630_v54, 0.0  ;;  %v1846_v43 = vsel %vm1836_vm14, %v1833_v29, 0.0  ;;  %v1866_v39 = vld [vmem:[#allocation2 + $0x61] sm:$0x1f]  ;;  %v1488_v46 = vadd.f32 %v1487_v37, %v1439_v45  ;;  %v2011_v6 = vsel %vm2002_vm3, %v1998_v38, 0.0  ;;  %v1536_v14 = vpop.f32.mrf.mxu3 }
 0x24b   :  { %v1789_v42 = vadd.f32 %v1779_v31, %v1756_v16  ;;  %v1653_v25 = vadd.f32 %v1643_v20, %v1620_v34  ;;  %v1988_v26 = vadd.f32 %v1978_v9, %v1954_v1  ;;  %v1676_v23 = vsel %vm1669_vm8, %v1663_v17, 0.0  ;;  %v2064_v18 = vld [vmem:[#allocation2 + $0x63] sm:$0x1f]  ;;  %v1796_v15 = vld [vmem:[#allocation2 + $0x2b] sm:$0x1f] }
 0x24c   :  { %v1710_v52 = vsel %vm1703_vm9, %v1697_v41, 0.0  ;;  %v1899_v56 = vld [vmem:[#allocation2 + $0x62] sm:$0x1f]  ;;  %v1537_v7 = vadd.f32 %v1536_v14, %v1488_v46  ;;  %v2044_v30 = vsel %vm2035_vm13, %v2031_v51, 0.0  ;;  %v1879_v35 = vsel %vm1869_vm15, %v1866_v39, 0.0 }
 0x24d   :  { %v1822_v11 = vadd.f32 %v1812_v36, %v1789_v42  ;;  %v2021_v48 = vadd.f32 %v2011_v6, %v1988_v26  ;;  %v1686_v3 = vadd.f32 %v1676_v23, %v1653_v25  ;;  %v1932_v53 = vld [vmem:[#allocation2 + $0x63] sm:$0x1f]  ;;  %v1966_v27 = vld [vmem:[#allocation2 + $0x68] sm:$0x1f]  ;;  %vm3862_vm0 = vcmp.eq.s32.totalorder %v3353_v8, 15 }
 0x24e   :  { %1556 = vst.msk [vmem:[#allocation2 + $0x70] sm:$0xff] %vm1541_vm4, %v1537_v7  ;;  %v2077_v24 = vsel %vm3862_vm0, %v2064_v18, 0.0  ;;  %vm3863_vm6 = vcmp.eq.s32.totalorder %v3353_v8, 10  ;;  %v1743_v44 = vsel %vm1736_vm10, %v1730_v60, 0.0  ;;  %v1830_v49 = vld [vmem:[#allocation2 + $0x30] sm:$0x1f]  ;;  %v1441_v33 = vadd.f32 %v1440_v57, %v1391_v63 }
 0x24f   :  { %v1856_v59 = vadd.f32 %v1846_v43, %v1822_v11  ;;  %v2054_v12 = vadd.f32 %v2044_v30, %v2021_v48  ;;  %v1720_v47 = vadd.f32 %v1710_v52, %v1686_v3  ;;  %v1912_v61 = vsel %vm3863_vm6, %v1899_v56, 0.0  ;;  %v1999_v10 = vld [vmem:[#allocation2 + $0x69] sm:$0x1f]  ;;  %v1863_v2 = vld [vmem:[#allocation2 + $0x31] sm:$0x1f] }
 0x250   :  { %v1945_v13 = vsel %vm1935_vm1, %v1932_v53, 0.0  ;;  %v1979_v58 = vsel %vm1969_vm2, %v1966_v27, 0.0  ;;  %v1776_v19 = vsel %vm1769_vm11, %v1763_v55, 0.0  ;;  %v1809_v40 = vsel %vm1802_vm12, %v1796_v15, 0.0  ;;  %v1568_v28 = vld [vmem:[#allocation2 + $0x58] sm:$0x1f] }
 0x251   :  { %v1889_v50 = vadd.f32 %v1879_v35, %v1856_v59  ;;  %v2087_v62 = vadd.f32 %v2077_v24, %v2054_v12  ;;  %v1753_v32 = vadd.f32 %v1743_v44, %v1720_v47  ;;  %v1489_v4 = vpop.f32.mrf.mxu2  ;;  %v1843_v16 = vsel %vm1836_vm14, %v1830_v49, 0.0  ;;  %v1601_v34 = vld [vmem:[#allocation2 + $0x59] sm:$0x1f]  ;;  %v2032_v41 = vld [vmem:[#allocation2 + $0x6a] sm:$0x1f] }
 0x252   :  { %v1490_v5 = vadd.f32 %v1489_v4, %v1441_v33  ;;  %v1538_v9 = vpop.f32.mrf.mxu3  ;;  %v1581_v1 = vsel %vm1570_vm5, %v1568_v28, 0.0  ;;  %vm3864_vm0 = vcmp.eq.s32.totalorder %v3353_v8, 1  ;;  %v1634_v42 = vld [vmem:[#allocation2 + $0x5a] sm:$0x1f]  ;;  %v2012_v20 = vsel %vm2002_vm3, %v1999_v10, 0.0 }
 0x253   :  { %v1922_v22 = vadd.f32 %v1912_v61, %v1889_v50  ;;  %v2110_v0 = vsel %vm2091_vm7, %v2087_v62, 0.0  ;;  %v1786_v54 = vadd.f32 %v1776_v19, %v1753_v32  ;;  %v1614_v38 = vsel %vm3864_vm0, %v1601_v34, 0.0  ;;  %v1667_v36 = vld [vmem:[#allocation2 + $0x5b] sm:$0x1f]  ;;  %v1701_v43 = vld [vmem:[#allocation2 + $0x60] sm:$0x1f] }
 0x254   :  { %2111 = vadd.xlane.f32.xlu1 %v2110_v0  ;;  %v1539_v29 = vadd.f32 %v1538_v9, %v1490_v5  ;;  %v1624_v45 = vadd.f32 %v1614_v38, %v1581_v1  ;;  %v2065_v37 = vld [vmem:[#allocation2 + $0x6b] sm:$0x1f]  ;;  %v1896_v51 = vld [vmem:[#allocation2 + $0x32] sm:$0x1f]  ;;  %vm3865_vm6 = vcmp.eq.s32.totalorder %v3353_v8, 2  ;;  %v2045_v39 = vsel %vm2035_vm13, %v2032_v41, 0.0 }
 0x255   :  { %v1955_v31 = vadd.f32 %v1945_v13, %v1922_v22  ;;  %v1819_v21 = vadd.f32 %v1809_v40, %v1786_v54  ;;  %v1647_v11 = vsel %vm3865_vm6, %v1634_v42, 0.0  ;;  %v1876_v46 = vsel %vm1869_vm15, %v1863_v2, 0.0  ;;  %v1929_v6 = vld [vmem:[#allocation2 + $0x33] sm:$0x1f]  ;;  %v1963_v48 = vld [vmem:[#allocation2 + $0x38] sm:$0x1f] }
 0x256   :  { %1557 = vst.msk [vmem:[#allocation2 + $0x78] sm:$0xff] %vm1541_vm4, %v1539_v29  ;;  %v1657_v23 = vadd.f32 %v1647_v11, %v1624_v45  ;;  %v1680_v18 = vsel %vm1669_vm8, %v1667_v36, 0.0  ;;  %v1714_v59 = vsel %vm1703_vm9, %v1701_v43, 0.0  ;;  %v1734_v56 = vld [vmem:[#allocation2 + $0x61] sm:$0x1f]  ;;  %vm3866_vm4 = vcmp.eq.s32.totalorder %v3353_v8, 15 }
 0x257   :  { %v1989_v17 = vadd.f32 %v1979_v58, %v1955_v31  ;;  %v1853_v26 = vadd.f32 %v1843_v16, %v1819_v21  ;;  %v2078_v3 = vsel %vm3866_vm4, %v2065_v37, 0.0  ;;  %vm3867_vm0 = vcmp.eq.s32.totalorder %v3353_v8, 10  ;;  %v1996_v57 = vld [vmem:[#allocation2 + $0x39] sm:$0x1f]  ;;  %v1767_v27 = vld [vmem:[#allocation2 + $0x62] sm:$0x1f] }
 0x258   :  { %v1909_v60 = vsel %vm3867_vm0, %v1896_v51, 0.0  ;;  %v1690_v7 = vadd.f32 %v1680_v18, %v1657_v23  ;;  %v1942_v63 = vsel %vm1935_vm1, %v1929_v6, 0.0  ;;  %v1976_v12 = vsel %vm1969_vm2, %v1963_v48, 0.0  ;;  %v1569_v47 = vld [vmem:[#allocation2 + $0x60] sm:$0x1f] }
 0x259   :  { %v2022_v25 = vadd.f32 %v2012_v20, %v1989_v17  ;;  %v1886_v14 = vadd.f32 %v1876_v46, %v1853_v26  ;;  %v1747_v53 = vsel %vm1736_vm10, %v1734_v56, 0.0  ;;  %v2029_v61 = vld [vmem:[#allocation2 + $0x3a] sm:$0x1f]  ;;  %v1800_v44 = vld [vmem:[#allocation2 + $0x63] sm:$0x1f]  ;;  %v1582_v62 = vsel %vm1570_vm5, %v1569_v47, 0.0 }
 0x25a   :  { %v1724_v50 = vadd.f32 %v1714_v59, %v1690_v7  ;;  %v1602_v22 = vld [vmem:[#allocation2 + $0x61] sm:$0x1f]  ;;  %v1834_v15 = vld [vmem:[#allocation2 + $0x68] sm:$0x1f]  ;;  %vm3868_vm6 = vcmp.eq.s32.totalorder %v3353_v8, 1  ;;  %v1780_v58 = vsel %vm1769_vm11, %v1767_v27, 0.0 }
 0x25b   :  { %v2055_v52 = vadd.f32 %v2045_v39, %v2022_v25  ;;  %v1919_v35 = vadd.f32 %v1909_v60, %v1886_v14  ;;  %v1615_v49 = vsel %vm3868_vm6, %v1602_v22, 0.0  ;;  %v1635_v33 = vld [vmem:[#allocation2 + $0x62] sm:$0x1f]  ;;  %v1702_v4 = vld [vmem:[#allocation2 + $0x68] sm:$0x1f]  ;;  %v2009_v31 = vsel %vm2002_vm3, %v1996_v57, 0.0 }
 0x25c   :  { %v1757_v32 = vadd.f32 %v1747_v53, %v1724_v50  ;;  %v1625_v19 = vadd.f32 %v1615_v49, %v1582_v62  ;;  %v1668_v0 = vld [vmem:[#allocation2 + $0x63] sm:$0x1f]  ;;  %vm3869_vm5 = vcmp.eq.s32.totalorder %v3353_v8, 2  ;;  %v2062_v5 = vld [vmem:[#allocation2 + $0x3b] sm:$0x1f]  ;;  %v1813_v40 = vsel %vm1802_vm12, %v1800_v44, 0.0 }
 0x25d   :  { %v2088_v30 = vadd.f32 %v2078_v3, %v2055_v52  ;;  %v1952_v24 = vadd.f32 %v1942_v63, %v1919_v35  ;;  %v1648_v54 = vsel %vm3869_vm5, %v1635_v33, 0.0  ;;  %v1847_v16 = vsel %vm1836_vm14, %v1834_v15, 0.0  ;;  %v1867_v17 = vld [vmem:[#allocation2 + $0x69] sm:$0x1f]  ;;  %v1967_v11 = vld [vmem:[#allocation2 + $0x70] sm:$0x1f] }
 0x25e   :  { %v1790_v10 = vadd.f32 %v1780_v58, %v1757_v32  ;;  %v1658_v28 = vadd.f32 %v1648_v54, %v1625_v19  ;;  %v2042_v34 = vsel %vm2035_vm13, %v2029_v61, 0.0  ;;  %v1681_v41 = vsel %vm1669_vm8, %v1668_v0, 0.0  ;;  %v1735_v42 = vld [vmem:[#allocation2 + $0x69] sm:$0x1f]  ;;  %vm3870_vm8 = vmmov %vm3867_vm0  ;;  %v1835_v14 = vld [vmem:[#allocation2 + $0x70] sm:$0x1f] }
 0x25f   :  { %v2113_v55 = vsel %vm2091_vm7, %v2088_v30, 0.0  ;;  %v1986_v13 = vadd.f32 %v1976_v12, %v1952_v24  ;;  %v1715_v21 = vsel %vm1703_vm9, %v1702_v4, 0.0  ;;  %v2075_v29 = vsel %vm3866_vm4, %v2062_v5, 0.0  ;;  %v1900_v45 = vld [vmem:[#allocation2 + $0x6a] sm:$0x1f]  ;;  %vm3871_vm9 = vmmov %vm3867_vm0 }
 0x260   :  { %2114 = vadd.xlane.f32.xlu2 %v2113_v55  ;;  %v1823_v9 = vadd.f32 %v1813_v40, %v1790_v10  ;;  %v1691_v38 = vadd.f32 %v1681_v41, %v1658_v28  ;;  %v1880_v43 = vsel %vm1869_vm15, %v1867_v17, 0.0  ;;  %v1768_v37 = vld [vmem:[#allocation2 + $0x6a] sm:$0x1f]  ;;  %v1748_v39 = vsel %vm1736_vm10, %v1735_v42, 0.0  ;;  %v2000_v7 = vld [vmem:[#allocation2 + $0x71] sm:$0x1f]  ;;  %vm3872_vm10 = vmmov %vm3866_vm4 }
 0x261   :  { %v2019_v2 = vadd.f32 %v2009_v31, %v1986_v13  ;;  %v1933_v51 = vld [vmem:[#allocation2 + $0x6b] sm:$0x1f]  ;;  %v1913_v6 = vsel %vm3870_vm8, %v1900_v45, 0.0  ;;  %v1781_v18 = vsel %vm1769_vm11, %v1768_v37, 0.0  ;;  %v1980_v56 = vsel %vm1969_vm2, %v1967_v11, 0.0  ;;  %vm3873_vm11 = vmmov %vm3866_vm4 }
 0x262   :  { %v1857_v20 = vadd.f32 %v1847_v16, %v1823_v9  ;;  %v1725_v25 = vadd.f32 %v1715_v21, %v1691_v38  ;;  %v1801_v52 = vld [vmem:[#allocation2 + $0x6b] sm:$0x1f]  ;;  %v1946_v59 = vsel %vm1935_vm1, %v1933_v51, 0.0  ;;  %v1848_v35 = vsel %vm1836_vm14, %v1835_v14, 0.0  ;;  %v1868_v57 = vld [vmem:[#allocation2 + $0x71] sm:$0x1f] }
 0x263   :  { %v2052_v1 = vadd.f32 %v2042_v34, %v2019_v2  ;;  %v1814_v30 = vsel %vm1802_vm12, %v1801_v52, 0.0  ;;  %v2033_v50 = vld [vmem:[#allocation2 + $0x72] sm:$0x1f]  ;;  %v2013_v53 = vsel %vm2002_vm3, %v2000_v7, 0.0  ;;  %v1881_v61 = vsel %vm1869_vm15, %v1868_v57, 0.0 }
 0x264   :  { %v1890_v26 = vadd.f32 %v1880_v43, %v1857_v20  ;;  %v1758_v23 = vadd.f32 %v1748_v39, %v1725_v25  ;;  %v1901_v47 = vld [vmem:[#allocation2 + $0x72] sm:$0x1f]  ;;  %v2046_v44 = vsel %vm2035_vm13, %v2033_v50, 0.0  ;;  %v1968_v32 = vld [vmem:[#allocation2 + $0x78] sm:$0x1f]  ;;  %vm2142_vm12 = vcmask 1041409  }
 0x265   :  { %v2085_v36 = vadd.f32 %v2075_v29, %v2052_v1  ;;  %v2066_v24 = vld [vmem:[#allocation2 + $0x73] sm:$0x1f]  ;;  %v1914_v49 = vsel %vm3871_vm9, %v1901_v47, 0.0  ;;  %v1981_v0 = vsel %vm1969_vm2, %v1968_v32, 0.0  ;;  %v2001_v31 = vld [vmem:[#allocation2 + $0x79] sm:$0x1f] }
 0x266   :  { %v1923_v48 = vadd.f32 %v1913_v6, %v1890_v26  ;;  %v1791_v3 = vadd.f32 %v1781_v18, %v1758_v23  ;;  %v1934_v22 = vld [vmem:[#allocation2 + $0x73] sm:$0x1f]  ;;  %v2079_v33 = vsel %vm3872_vm10, %v2066_v24, 0.0  ;;  %v2034_v2 = vld [vmem:[#allocation2 + $0x7a] sm:$0x1f]  ;;  %v2014_v5 = vsel %vm2002_vm3, %v2001_v31, 0.0 }
 0x267   :  { %v2104_v46 = vsel %vm2091_vm7, %v2085_v36, 0.0  ;;  %v1947_v19 = vsel %vm1935_vm1, %v1934_v22, 0.0  ;;  %v2067_v16 = vld [vmem:[#allocation2 + $0x7b] sm:$0x1f]  ;;  %v2047_v28 = vsel %vm2035_vm13, %v2034_v2, 0.0  ;;  %vm2145_vm13 = vcmask 1043459  }
 0x268   :  { %2105 = vadd.xlane.f32.xlu2 %v2104_v46  ;;  %v1956_v60 = vadd.f32 %v1946_v59, %v1923_v48  ;;  %v1824_v63 = vadd.f32 %v1814_v30, %v1791_v3  ;;  %v2080_v9 = vsel %vm3873_vm11, %v2067_v16, 0.0  ;;  %vm3874_vm14 = vcmask 1042434  }
 0x269   :  { %vm2155_vm15 = vcmask 36864   ;;  %vm3875_vm1 = vmmov %vm3874_vm14 }
 0x26a   :  { %v1990_v12 = vadd.f32 %v1980_v56, %v1956_v60  ;;  %v1858_v27 = vadd.f32 %v1848_v35, %v1824_v63 }
 0x26c   :  { %v2023_v55 = vadd.f32 %v2013_v53, %v1990_v12  ;;  %v1891_v62 = vadd.f32 %v1881_v61, %v1858_v27 }
 0x26e   :  { %v2056_v15 = vadd.f32 %v2046_v44, %v2023_v55  ;;  %v1924_v13 = vadd.f32 %v1914_v49, %v1891_v62 }
 0x270   :  { %v2089_v58 = vadd.f32 %v2079_v33, %v2056_v15  ;;  %v1957_v4 = vadd.f32 %v1947_v19, %v1924_v13 }
 0x272   :  { %v2116_v10 = vsel %vm2091_vm7, %v2089_v58, 0.0  ;;  %v1991_v54 = vadd.f32 %v1981_v0, %v1957_v4 }
 0x273   :  { %2117 = vadd.xlane.f32.xlu1 %v2116_v10 }
 0x274   :  { %v2024_v40 = vadd.f32 %v2014_v5, %v1991_v54 }
 0x276   :  { %v2057_v34 = vadd.f32 %v2047_v28, %v2024_v40 }
 0x278   :  { %v2090_v17 = vadd.f32 %v2080_v9, %v2057_v34 }
 0x27a   :  { %v2119_v41 = vsel %vm2091_vm7, %v2090_v17, 0.0  ;;  %vm2147_vm7 = vcmask 1044484  }
 0x27b   :  { %2120 = vadd.xlane.f32.xlu0 %v2119_v41 }
 0x27f   :  { %v2094_v21 = vpop.xlane.xlu0 %2093 }
 0x280   :  { %v2132_v36 = vperm.slane %v2094_v21, %v3353_v8 }
 0x287   :  { %v2097_v38 = vpop.xlane.xlu0 %2096 }
 0x288   :  { %v2133_v20 = vperm.slane %v2097_v38, %v3353_v8 }
 0x28a   :  { %v2143_v37 = vsel %vm2142_vm12, %v2133_v20, %v2132_v36 }
 0x293   :  { %v2100_v1 = vpop.xlane.xlu2 %2099 }
 0x294   :  { %v2134_v45 = vperm.slane %v2100_v1, %v3353_v8 }
 0x296   :  { %v2144_v51 = vsel %vm3874_vm14, %v2134_v45, %v2143_v37 }
 0x29d   :  { %v2103_v29 = vpop.xlane.xlu0 %2102 }
 0x29e   :  { %v2135_v43 = vperm.slane %v2103_v29, %v3353_v8 }
 0x2a0   :  { %v2146_v39 = vsel %vm2145_vm13, %v2135_v43, %v2144_v51 }
 0x2bc   :  { %v2109_v25 = vpop.xlane.xlu1 %2108 }
 0x2bd   :  { %v2137_v48 = vperm.slane %v2109_v25, %v3353_v8 }
 0x2c7   :  { %v2112_v6 = vpop.xlane.xlu1 %2111 }
 0x2c8   :  { %v2138_v52 = vperm.slane %v2112_v6, %v3353_v8 }
 0x2ca   :  { %v2149_v59 = vsel %vm2142_vm12, %v2138_v52, %v2137_v48 }
 0x2d3   :  { %v2115_v42 = vpop.xlane.xlu2 %2114 }
 0x2d4   :  { %v2139_v14 = vperm.slane %v2115_v42, %v3353_v8 }
 0x2d6   :  { %v2150_v3 = vsel %vm3875_vm1, %v2139_v14, %v2149_v59 }
 0x2db   :  { %v2106_v26 = vpop.xlane.xlu2 %2105 }
 0x2dc   :  { %v2136_v11 = vperm.slane %v2106_v26, %v3353_v8 }
 0x2de   :  { %v2148_v46 = vsel %vm2147_vm7, %v2136_v11, %v2146_v39 }
 0x2df   :  { %2156 = vst.msk [vmem:[%s3746_s5] sm:$0x1f] %vm2155_vm15, %v2148_v46 }
 0x2e6   :  { %v2118_v23 = vpop.xlane.xlu1 %2117 }
 0x2e7   :  { %v2140_v18 = vperm.slane %v2118_v23, %v3353_v8 }
 0x2e9   :  { %v2151_v7 = vsel %vm2145_vm13, %v2140_v18, %v2150_v3 }
 0x2ee   :  { %v2121_v56 = vpop.xlane.xlu0 %2120 }
 0x2ef   :  { %v2141_v60 = vperm.slane %v2121_v56, %v3353_v8 }
 0x2f1   :  { %v2152_v30 = vsel %vm2147_vm7, %v2141_v60, %v2151_v7 }
 0x2f2   :  { %2157 = vst.msk [vmem:[%s3746_s5 + $0x8] sm:$0x1f] %vm2155_vm15, %v2152_v30 }

</bundles_post_ra>
